<compile_context>
chip_gen: v6e
topology: v6e:2x2x1
jax: 0.10.0
libtpu: 0.0.40
codegen_flags: <defaults>
</compile_context>

<pallas_src>
import functools
import math

import jax
import jax.numpy as jnp
from jax.experimental import pallas as pl
from jax.experimental.pallas import tpu as pltpu

LANE = 128  # vreg lane width / MXU-friendly granularity


def _round_up(x, m):
    return (x + m - 1) // m * m


def _pick_tile(n_pad, candidates):
    for c in candidates:
        if n_pad % c == 0:
            return c
    return LANE


def _pad2(x, rows, cols):
    return jnp.pad(x, ((0, rows - x.shape[0]), (0, cols - x.shape[1])))


# ----------------------------- fused kernel ---------------------------------

def _make_gin_kernel(tm, tk, use_aug):
    """Fused GIN forward.  Grid = (n_layers, N/tm row tiles, N/tk k tiles)."""

    def kernel(*refs):
        if use_aug:
            (a_ref, x0_ref, w_in_ref, b_in_ref,
             w_x_ref, w_i_ref, b_ref,
             w_out0_ref, w_outl_ref, b_out_ref,
             o_ref, h_scr, p_scr, acc_scr) = refs
        else:
            (a_ref, x0_ref, w_in_ref, b_in_ref,
             w_x_ref, b_ref,
             w_out0_ref, w_outl_ref, b_out_ref,
             o_ref, h_scr, p_scr, acc_scr) = refs
            w_i_ref = None

        l = pl.program_id(0)          # layer index        (sequential)
        i = pl.program_id(1)          # node row tile
        k = pl.program_id(2)          # A reduction tile
        nk = pl.num_programs(2)

        k_row = pl.multiple_of(k * tk, tk)
        row = pl.multiple_of(i * tm, tm)

        # --- very first grid step: in_proj for all nodes + output init -----
        @pl.when((l == 0) & (i == 0) & (k == 0))
        def _init():
            h0 = (jnp.dot(x0_ref[...], w_in_ref[...],
                          preferred_element_type=jnp.float32)
                  + b_in_ref[...])
            h_scr[...] = h0                                  # H_0
            # out accumulator starts at b_out + H0 @ W_out[chunk 0]
            o_ref[...] = (jnp.dot(h0, w_out0_ref[...],
                                  preferred_element_type=jnp.float32)
                          + b_out_ref[...])

        # --- layer start (i == 0 sweep): lazily project rows [k*tk, k*tk+tk)
        # of H_l (and X0) into the bf16 P buffer, overlapped with A streaming.
        # (W applied BEFORE A: (X_in + A@X_in)@W == P + A@P, inner dim = hp.)
        @pl.when(i == 0)
        def _project():
            p = jnp.dot(h_scr[pl.ds(k_row, tk), :], w_x_ref[0],
                        preferred_element_type=jnp.float32)
            if use_aug:
                p = p + jnp.dot(x0_ref[pl.ds(k_row, tk), :], w_i_ref[0],
                                preferred_element_type=jnp.float32)
            p_scr[pl.ds(k_row, tk), :] = p.astype(jnp.bfloat16)

        # --- A @ P reduction over k tiles (f32 accumulator) -----------------
        @pl.when(k == 0)
        def _zero_acc():
            acc_scr[...] = jnp.zeros_like(acc_scr)

        # int8-stored A -> bf16 in-register; bf16 x bf16 MXU, f32 accumulate.
        acc_scr[...] += jnp.dot(a_ref[...].astype(jnp.bfloat16),
                                p_scr[pl.ds(k_row, tk), :],
                                preferred_element_type=jnp.float32)

        # --- last k tile: finalize H_{l+1} row tile, fold into output ------
        @pl.when(k == nk - 1)
        def _finalize():
            h_new = jnp.maximum(
                p_scr[pl.ds(row, tm), :].astype(jnp.float32)
                + acc_scr[...] + b_ref[0], 0.0)
            h_scr[pl.ds(row, tm), :] = h_new                 # becomes H_{l+1}
            o_ref[pl.ds(row, tm), :] += jnp.dot(
                h_new, w_outl_ref[0], preferred_element_type=jnp.float32)

    return kernel


# ------------------------------ wrapper --------------------------------------

@functools.partial(jax.jit, static_argnames=("use_aug",))
def gin_forward(params, a, x, *, use_aug):
    n, f0 = x.shape
    w_in, b_in = params["in_proj"]
    hidden = w_in.shape[1]
    convs = params["convs"]
    n_layers = len(convs)
    w_out, b_out = params["out_proj"]
    dout = w_out.shape[1]
    assert n_layers >= 1  # TODO(synk): n_layers == 0 degenerate case not fused.

    # Lane-dense padded sizes (multiples of 128) and node-dim tiles.
    f0p = _round_up(f0, LANE)
    hp = _round_up(hidden, LANE)
    dop = _round_up(dout, LANE)
    n_pad = _round_up(n, LANE)
    tm = _pick_tile(n_pad, (512, 256, 128))                   # A row tile
    tk = _pick_tile(n_pad, (2048, 1024, 512, 256, 128))       # A reduction tile
    assert tk >= tm  # lazy P projection relies on tk >= tm (see kernel).

    # Adjacency streamed as int8 (0/1 values are exact); zero padding is inert.
    a_p = _pad2(a.astype(jnp.float32), n_pad, n_pad).astype(jnp.int8)
    x0_p = _pad2(x.astype(jnp.float32), n_pad, f0p)

    w_in_p = _pad2(w_in, f0p, hp)
    b_in_p = _pad2(b_in, 1, hp)

    # Split each conv weight so the per-layer concat([X0, X]) never exists:
    # rows [:f0] multiply X0 (augmentation), rows [f0:] multiply the hidden state.
    w_x_list, w_i_list, b_list = [], [], []
    for (w, b) in convs:
        if use_aug:
            w_i_list.append(_pad2(w[:f0], f0p, hp))
            w_x_list.append(_pad2(w[f0:], hp, hp))
        else:
            w_x_list.append(_pad2(w, hp, hp))
        b_list.append(_pad2(b, 1, hp))
    w_x_all = jnp.stack(w_x_list)        # [L, HP, HP]
    b_all = jnp.stack(b_list)            # [L, 1, HP]

    # Split out_proj per hidden state so the final concat never exists either.
    w_out_chunks = [_pad2(w_out[c * hidden:(c + 1) * hidden], hp, dop)
                    for c in range(n_layers + 1)]
    w_out0 = w_out_chunks[0]                       # for H0
    w_outl_all = jnp.stack(w_out_chunks[1:])       # [L, HP, DOUTP], for H_{l+1}
    b_out_p = _pad2(b_out, 1, dop)

    grid = (n_layers, n_pad // tm, n_pad // tk)
    kernel = _make_gin_kernel(tm, tk, use_aug)

    # Constant-index-map residents: single buffer (no pointless double-buffer).
    resident = pl.Buffered(1)
    in_specs = [
        pl.BlockSpec((tm, tk), lambda l, i, k: (i, k)),              # A (int8, streamed)
        pl.BlockSpec((n_pad, f0p), lambda l, i, k: (0, 0),
                     pipeline_mode=resident),                        # X0 (resident)
        pl.BlockSpec((f0p, hp), lambda l, i, k: (0, 0),
                     pipeline_mode=resident),                        # W_in
        pl.BlockSpec((1, hp), lambda l, i, k: (0, 0),
                     pipeline_mode=resident),                        # b_in
        pl.BlockSpec((1, hp, hp), lambda l, i, k: (l, 0, 0)),        # W_x[l]
    ]
    operands = [a_p, x0_p, w_in_p, b_in_p, w_x_all]
    if use_aug:
        w_i_all = jnp.stack(w_i_list)    # [L, F0P, HP]
        in_specs.append(pl.BlockSpec((1, f0p, hp), lambda l, i, k: (l, 0, 0)))
        operands.append(w_i_all)
    in_specs += [
        pl.BlockSpec((1, 1, hp), lambda l, i, k: (l, 0, 0)),         # b[l]
        pl.BlockSpec((hp, dop), lambda l, i, k: (0, 0),
                     pipeline_mode=resident),                        # W_out chunk 0
        pl.BlockSpec((1, hp, dop), lambda l, i, k: (l, 0, 0)),       # W_out chunk l+1
        pl.BlockSpec((1, dop), lambda l, i, k: (0, 0),
                     pipeline_mode=resident),                        # b_out
    ]
    operands += [b_all, w_out0, w_outl_all, b_out_p]

    # Explicit VMEM budget: resident H (f32) + P (bf16) + X0 + output + the
    # streamed / double-buffered tiles, with headroom for compiler scratch.
    resident_bytes = (
        n_pad * hp * 4                    # h_scr
        + n_pad * hp * 2                  # p_scr (bf16)
        + tm * hp * 4                     # acc_scr
        + n_pad * f0p * 4                 # X0 (single-buffered)
        + 2 * n_pad * dop * 4             # output block (default buffering)
        + 2 * tm * tk                     # A int8, double-buffered
        + f0p * hp * 4 + hp * 4           # W_in, b_in
        + 2 * hp * hp * 4                 # W_x[l], double-buffered
        + (2 * f0p * hp * 4 if use_aug else 0)
        + 2 * hp * 4                      # b[l]
        + hp * dop * 4                    # W_out chunk 0
        + 2 * hp * dop * 4                # W_out chunk l+1
        + dop * 4)                        # b_out
    vmem_limit = int(min(127 * 2**20, max(2 * resident_bytes, 32 * 2**20)))

    out_pad = pl.pallas_call(
        kernel,
        out_shape=jax.ShapeDtypeStruct((n_pad, dop), jnp.float32),
        grid_spec=pltpu.PrefetchScalarGridSpec(
            num_scalar_prefetch=0,
            grid=grid,
            in_specs=in_specs,
            out_specs=pl.BlockSpec((n_pad, dop), lambda l, i, k: (0, 0)),
            scratch_shapes=[
                pltpu.VMEM((n_pad, hp), jnp.float32),    # H_l  (current hidden state)
                pltpu.VMEM((n_pad, hp), jnp.bfloat16),   # P_l  (bf16 MXU operand)
                pltpu.VMEM((tm, hp), jnp.float32),       # A@P row-tile accumulator
            ]),
        compiler_params=pltpu.CompilerParams(
            # Layer axis is sequential; row/reduction axes share resident
            # scratch + the output accumulator, so all are "arbitrary".
            dimension_semantics=("arbitrary", "arbitrary", "arbitrary"),
            vmem_limit_bytes=vmem_limit),
    )(*operands)

    return out_pad[:n, :dout]


# ------------------------------ parameters -----------------------------------

def init_linear(key, fan_in, fan_out):
    """Matches torch.nn.Linear's U(-1/sqrt(fan_in), 1/sqrt(fan_in)) init.
    W stored already transposed to [fan_in, fan_out] so forward is x @ W."""
    k_w, k_b = jax.random.split(key)
    bound = 1.0 / math.sqrt(fan_in)
    w = jax.random.uniform(k_w, (fan_in, fan_out), jnp.float32, -bound, bound)
    b = jax.random.uniform(k_b, (1, fan_out), jnp.float32, -bound, bound)
    return w, b


def init_gin_params(key, input_dim, hidden_dim, output_dim, n_layers, use_aug):
    hidden_input_dim = input_dim + hidden_dim if use_aug else hidden_dim
    keys = jax.random.split(key, n_layers + 2)
    return {
        "in_proj": init_linear(keys[0], input_dim, hidden_dim),
        "convs": [init_linear(keys[1 + i], hidden_input_dim, hidden_dim)
                  for i in range(n_layers)],
        "out_proj": init_linear(keys[-1], hidden_dim * (1 + n_layers), output_dim),
    }


# ------------------------------ reference ------------------------------------

def gin_forward_ref(params, a, x, use_aug):
    """Pure-JAX reference mirroring the PyTorch forward exactly (f32)."""
    initial_x = x
    w, b = params["in_proj"]
    x = x @ w + b
    hidden_states = [x]
    for (w, b) in params["convs"]:
        x_in = jnp.concatenate([initial_x, x], axis=1) if use_aug else x
        x = jax.nn.relu((x_in + a @ x_in) @ w + b)
        hidden_states.append(x)
    x = jnp.concatenate(hidden_states, axis=1)
    w, b = params["out_proj"]
    return x @ w + b


# --------------------------------- main ---------------------------------------

if __name__ == "__main__":
    # Small graph: 8 nodes, 4 input feats, 32 hidden, 8 output, 2 GIN layers.
    N, INPUT_DIM, HIDDEN_DIM, OUTPUT_DIM, N_LAYERS = 8, 4, 32, 8, 2

    key = jax.random.PRNGKey(0)
    k_a, k_x, k_p1, k_p2 = jax.random.split(key, 4)

    # Symmetric 0/1 adjacency (no self loops), dense float32.
    a_rand = jax.random.uniform(k_a, (N, N))
    a = (a_rand + a_rand.T > 1.0).astype(jnp.float32)
    a = a * (1.0 - jnp.eye(N, dtype=jnp.float32))

    x = jax.random.normal(k_x, (N, INPUT_DIM), jnp.float32)

    # The bf16 MXU path (bf16-resident P) costs ~2^-8 relative per layer, so
    # compare against the exact-f32 reference with a bf16-appropriate tolerance.
    TOL = dict(atol=5e-2, rtol=5e-2)

    for use_aug, k_p in ((True, k_p1), (False, k_p2)):
        params = init_gin_params(k_p, INPUT_DIM, HIDDEN_DIM, OUTPUT_DIM,
                                 N_LAYERS, use_aug)
        out = jax.block_until_ready(gin_forward(params, a, x, use_aug=use_aug))
        ref = gin_forward_ref(params, a, x, use_aug)
        assert out.shape == (N, OUTPUT_DIM)
        max_err = float(jnp.max(jnp.abs(out - ref)))
        assert jnp.allclose(out, ref, **TOL), \
            f"mismatch vs reference (use_aug={use_aug}, max abs err {max_err})"

    print("KERNEL_OK")
</pallas_src>

<mosaic_0001>
module attributes {stable_mosaic.version = 11 : i64} {
  func.func @kernel(%arg0: i32, %arg1: i32, %arg2: i32, %arg3: memref<128x128xi8, #tpu.memory_space<vmem>>, %arg4: memref<128x128xf32, #tpu.memory_space<vmem>>, %arg5: memref<128x128xf32, #tpu.memory_space<vmem>>, %arg6: memref<1x128xf32, #tpu.memory_space<vmem>>, %arg7: memref<1x128x128xf32, #tpu.memory_space<vmem>>, %arg8: memref<1x128x128xf32, #tpu.memory_space<vmem>>, %arg9: memref<1x1x128xf32, #tpu.memory_space<vmem>>, %arg10: memref<128x128xf32, #tpu.memory_space<vmem>>, %arg11: memref<1x128x128xf32, #tpu.memory_space<vmem>>, %arg12: memref<1x128xf32, #tpu.memory_space<vmem>>, %arg13: memref<128x128xf32, #tpu.memory_space<vmem>>, %arg14: memref<128x128xf32, #tpu.memory_space<vmem>>, %arg15: memref<128x128xbf16, #tpu.memory_space<vmem>>, %arg16: memref<128x128xf32, #tpu.memory_space<vmem>>) attributes {dimension_semantics = [#tpu.dimension_semantics<arbitrary>, #tpu.dimension_semantics<arbitrary>, #tpu.dimension_semantics<arbitrary>], iteration_bounds = array<i64: 2, 1, 1>, scalar_prefetch = 0 : i64, scratch_operands = 3 : i64, tpu.core_type = #tpu.core_type<tc>, window_params = [{transform_indices = @transform_0, window_bounds = array<i64: 128, 128>}, {pipeline_mode = #tpu.pipeline_mode<synchronous>, transform_indices = @transform_1, window_bounds = array<i64: 128, 128>}, {pipeline_mode = #tpu.pipeline_mode<synchronous>, transform_indices = @transform_2, window_bounds = array<i64: 128, 128>}, {pipeline_mode = #tpu.pipeline_mode<synchronous>, transform_indices = @transform_3, window_bounds = array<i64: 1, 128>}, {transform_indices = @transform_4, window_bounds = array<i64: 1, 128, 128>}, {transform_indices = @transform_5, window_bounds = array<i64: 1, 128, 128>}, {transform_indices = @transform_6, window_bounds = array<i64: 1, 1, 128>}, {pipeline_mode = #tpu.pipeline_mode<synchronous>, transform_indices = @transform_7, window_bounds = array<i64: 128, 128>}, {transform_indices = @transform_8, window_bounds = array<i64: 1, 128, 128>}, {pipeline_mode = #tpu.pipeline_mode<synchronous>, transform_indices = @transform_9, window_bounds = array<i64: 1, 128>}, {pipeline_mode = #tpu.pipeline_mode<synchronous>, transform_indices = @transform_10, window_bounds = array<i64: 128, 128>}]} {
    %c128_i32 = arith.constant 128 : i32
    %0 = arith.muli %arg2, %c128_i32 : i32
    %1 = tpu.assume_multiple %0, 128 : i32
    %c128_i32_0 = arith.constant 128 : i32
    %2 = arith.muli %arg1, %c128_i32_0 : i32
    %3 = tpu.assume_multiple %2, 128 : i32
    %c0_i32 = arith.constant 0 : i32
    %4 = arith.cmpi eq, %arg0, %c0_i32 : i32
    %c0_i32_1 = arith.constant 0 : i32
    %5 = arith.cmpi eq, %arg1, %c0_i32_1 : i32
    %6 = arith.andi %4, %5 : i1
    %c0_i32_2 = arith.constant 0 : i32
    %7 = arith.cmpi eq, %arg2, %c0_i32_2 : i32
    %8 = arith.andi %6, %7 : i1
    %9 = arith.extui %8 : i1 to i32
    %c0_i32_3 = arith.constant 0 : i32
    %10 = arith.cmpi ne, %9, %c0_i32_3 : i32
    scf.if %10 {
      %c0_16 = arith.constant 0 : index
      %c0_17 = arith.constant 0 : index
      %28 = vector.load %arg4[%c0_16, %c0_17] : memref<128x128xf32, #tpu.memory_space<vmem>>, vector<128x128xf32>
      %c0_18 = arith.constant 0 : index
      %c0_19 = arith.constant 0 : index
      %29 = vector.load %arg5[%c0_18, %c0_19] : memref<128x128xf32, #tpu.memory_space<vmem>>, vector<128x128xf32>
      %cst_20 = arith.constant dense<0.000000e+00> : vector<128x128xf32>
      %30 = tpu.matmul %28, %29, %cst_20 {dimension_numbers = #tpu.dot_dimension_numbers<[1], [0], [0], [1], [0, 0, 1, 1], [], []>} : vector<128x128xf32>, vector<128x128xf32>, vector<128x128xf32> -> vector<128x128xf32>
      %c0_21 = arith.constant 0 : index
      %c0_22 = arith.constant 0 : index
      %31 = vector.load %arg6[%c0_21, %c0_22] : memref<1x128xf32, #tpu.memory_space<vmem>>, vector<1x128xf32>
      %32 = vector.broadcast %31 : vector<1x128xf32> to vector<128x128xf32>
      %33 = arith.addf %30, %32 : vector<128x128xf32>
      %c0_23 = arith.constant 0 : index
      %c0_24 = arith.constant 0 : index
      %34 = vector.load %arg14[%c0_23, %c0_24] : memref<128x128xf32, #tpu.memory_space<vmem>>, vector<128x128xf32>
      tpu.vector_store %arg14[%c0_23, %c0_24], %33 {strides = array<i32>} : memref<128x128xf32, #tpu.memory_space<vmem>>, vector<128x128xf32>,
      %c0_25 = arith.constant 0 : index
      %c0_26 = arith.constant 0 : index
      %35 = vector.load %arg10[%c0_25, %c0_26] : memref<128x128xf32, #tpu.memory_space<vmem>>, vector<128x128xf32>
      %cst_27 = arith.constant dense<0.000000e+00> : vector<128x128xf32>
      %36 = tpu.matmul %33, %35, %cst_27 {dimension_numbers = #tpu.dot_dimension_numbers<[1], [0], [0], [1], [0, 0, 1, 1], [], []>} : vector<128x128xf32>, vector<128x128xf32>, vector<128x128xf32> -> vector<128x128xf32>
      %c0_28 = arith.constant 0 : index
      %c0_29 = arith.constant 0 : index
      %37 = vector.load %arg12[%c0_28, %c0_29] : memref<1x128xf32, #tpu.memory_space<vmem>>, vector<1x128xf32>
      %38 = vector.broadcast %37 : vector<1x128xf32> to vector<128x128xf32>
      %39 = arith.addf %36, %38 : vector<128x128xf32>
      %c0_30 = arith.constant 0 : index
      %c0_31 = arith.constant 0 : index
      %40 = vector.load %arg13[%c0_30, %c0_31] : memref<128x128xf32, #tpu.memory_space<vmem>>, vector<128x128xf32>
      tpu.vector_store %arg13[%c0_30, %c0_31], %39 {strides = array<i32>} : memref<128x128xf32, #tpu.memory_space<vmem>>, vector<128x128xf32>,
    } else {
    }
    %c0_i32_4 = arith.constant 0 : i32
    %11 = arith.cmpi eq, %arg1, %c0_i32_4 : i32
    %12 = arith.extui %11 : i1 to i32
    %c0_i32_5 = arith.constant 0 : i32
    %13 = arith.cmpi ne, %12, %c0_i32_5 : i32
    scf.if %13 {
      %28 = arith.index_cast %1 : i32 to index
      %c0_16 = arith.constant 0 : index
      %29 = vector.load %arg14[%28, %c0_16] : memref<128x128xf32, #tpu.memory_space<vmem>>, vector<128x128xf32>
      %c0_17 = arith.constant 0 : index
      %c0_18 = arith.constant 0 : index
      %c0_19 = arith.constant 0 : index
      %30 = vector.load %arg7[%c0_17, %c0_18, %c0_19] : memref<1x128x128xf32, #tpu.memory_space<vmem>>, vector<1x128x128xf32>
      %31 = vector.shape_cast %30 : vector<1x128x128xf32> to vector<128x128xf32>
      %cst_20 = arith.constant dense<0.000000e+00> : vector<128x128xf32>
      %32 = tpu.matmul %29, %31, %cst_20 {dimension_numbers = #tpu.dot_dimension_numbers<[1], [0], [0], [1], [0, 0, 1, 1], [], []>} : vector<128x128xf32>, vector<128x128xf32>, vector<128x128xf32> -> vector<128x128xf32>
      %33 = arith.index_cast %1 : i32 to index
      %c0_21 = arith.constant 0 : index
      %34 = vector.load %arg4[%33, %c0_21] : memref<128x128xf32, #tpu.memory_space<vmem>>, vector<128x128xf32>
      %c0_22 = arith.constant 0 : index
      %c0_23 = arith.constant 0 : index
      %c0_24 = arith.constant 0 : index
      %35 = vector.load %arg8[%c0_22, %c0_23, %c0_24] : memref<1x128x128xf32, #tpu.memory_space<vmem>>, vector<1x128x128xf32>
      %36 = vector.shape_cast %35 : vector<1x128x128xf32> to vector<128x128xf32>
      %cst_25 = arith.constant dense<0.000000e+00> : vector<128x128xf32>
      %37 = tpu.matmul %34, %36, %cst_25 {dimension_numbers = #tpu.dot_dimension_numbers<[1], [0], [0], [1], [0, 0, 1, 1], [], []>} : vector<128x128xf32>, vector<128x128xf32>, vector<128x128xf32> -> vector<128x128xf32>
      %38 = arith.addf %32, %37 : vector<128x128xf32>
      %39 = arith.truncf %38 : vector<128x128xf32> to vector<128x128xbf16>
      %40 = arith.index_cast %1 : i32 to index
      %c0_26 = arith.constant 0 : index
      %41 = vector.load %arg15[%40, %c0_26] : memref<128x128xbf16, #tpu.memory_space<vmem>>, vector<128x128xbf16>
      tpu.vector_store %arg15[%40, %c0_26], %39 {strides = array<i32>} : memref<128x128xbf16, #tpu.memory_space<vmem>>, vector<128x128xbf16>,
    } else {
    }
    %c0_i32_6 = arith.constant 0 : i32
    %14 = arith.cmpi eq, %arg2, %c0_i32_6 : i32
    %15 = arith.extui %14 : i1 to i32
    %c0_i32_7 = arith.constant 0 : i32
    %16 = arith.cmpi ne, %15, %c0_i32_7 : i32
    scf.if %16 {
      %cst_16 = arith.constant 0.000000e+00 : f32
      %28 = vector.broadcast %cst_16 : f32 to vector<128x128xf32>
      %c0_17 = arith.constant 0 : index
      %c0_18 = arith.constant 0 : index
      %29 = vector.load %arg16[%c0_17, %c0_18] : memref<128x128xf32, #tpu.memory_space<vmem>>, vector<128x128xf32>
      tpu.vector_store %arg16[%c0_17, %c0_18], %28 {strides = array<i32>} : memref<128x128xf32, #tpu.memory_space<vmem>>, vector<128x128xf32>,
    } else {
    }
    %c0 = arith.constant 0 : index
    %c0_8 = arith.constant 0 : index
    %17 = vector.load %arg16[%c0, %c0_8] : memref<128x128xf32, #tpu.memory_space<vmem>>, vector<128x128xf32>
    %c0_9 = arith.constant 0 : index
    %c0_10 = arith.constant 0 : index
    %18 = vector.load %arg3[%c0_9, %c0_10] : memref<128x128xi8, #tpu.memory_space<vmem>>, vector<128x128xi8>
    %19 = arith.sitofp %18 : vector<128x128xi8> to vector<128x128xbf16>
    %20 = arith.index_cast %1 : i32 to index
    %c0_11 = arith.constant 0 : index
    %21 = vector.load %arg15[%20, %c0_11] : memref<128x128xbf16, #tpu.memory_space<vmem>>, vector<128x128xbf16>
    %cst = arith.constant dense<0.000000e+00> : vector<128x128xf32>
    %22 = tpu.matmul %19, %21, %cst {dimension_numbers = #tpu.dot_dimension_numbers<[1], [0], [0], [1], [0, 0, 1, 1], [], []>} : vector<128x128xbf16>, vector<128x128xbf16>, vector<128x128xf32> -> vector<128x128xf32>
    %23 = arith.addf %17, %22 : vector<128x128xf32>
    %c0_12 = arith.constant 0 : index
    %c0_13 = arith.constant 0 : index
    %24 = vector.load %arg16[%c0_12, %c0_13] : memref<128x128xf32, #tpu.memory_space<vmem>>, vector<128x128xf32>
    tpu.vector_store %arg16[%c0_12, %c0_13], %23 {strides = array<i32>} : memref<128x128xf32, #tpu.memory_space<vmem>>, vector<128x128xf32>,
    %c0_i32_14 = arith.constant 0 : i32
    %25 = arith.cmpi eq, %arg2, %c0_i32_14 : i32
    %26 = arith.extui %25 : i1 to i32
    %c0_i32_15 = arith.constant 0 : i32
    %27 = arith.cmpi ne, %26, %c0_i32_15 : i32
    scf.if %27 {
      %28 = arith.index_cast %3 : i32 to index
      %c0_16 = arith.constant 0 : index
      %29 = vector.load %arg15[%28, %c0_16] : memref<128x128xbf16, #tpu.memory_space<vmem>>, vector<128x128xbf16>
      %30 = arith.extf %29 : vector<128x128xbf16> to vector<128x128xf32>
      %c0_17 = arith.constant 0 : index
      %c0_18 = arith.constant 0 : index
      %31 = vector.load %arg16[%c0_17, %c0_18] : memref<128x128xf32, #tpu.memory_space<vmem>>, vector<128x128xf32>
      %32 = arith.addf %30, %31 : vector<128x128xf32>
      %c0_19 = arith.constant 0 : index
      %c0_20 = arith.constant 0 : index
      %c0_21 = arith.constant 0 : index
      %33 = vector.load %arg9[%c0_19, %c0_20, %c0_21] : memref<1x1x128xf32, #tpu.memory_space<vmem>>, vector<1x1x128xf32>
      %34 = vector.shape_cast %33 : vector<1x1x128xf32> to vector<1x128xf32>
      %35 = vector.broadcast %34 : vector<1x128xf32> to vector<128x128xf32>
      %36 = arith.addf %32, %35 : vector<128x128xf32>
      %cst_22 = arith.constant 0.000000e+00 : f32
      %37 = vector.broadcast %cst_22 : f32 to vector<128x128xf32>
      %38 = arith.maximumf %36, %37 : vector<128x128xf32>
      %39 = arith.index_cast %3 : i32 to index
      %c0_23 = arith.constant 0 : index
      %40 = vector.load %arg14[%39, %c0_23] : memref<128x128xf32, #tpu.memory_space<vmem>>, vector<128x128xf32>
      tpu.vector_store %arg14[%39, %c0_23], %38 {strides = array<i32>} : memref<128x128xf32, #tpu.memory_space<vmem>>, vector<128x128xf32>,
      %41 = arith.index_cast %3 : i32 to index
      %c0_24 = arith.constant 0 : index
      %42 = vector.load %arg13[%41, %c0_24] : memref<128x128xf32, #tpu.memory_space<vmem>>, vector<128x128xf32>
      %c0_25 = arith.constant 0 : index
      %c0_26 = arith.constant 0 : index
      %c0_27 = arith.constant 0 : index
      %43 = vector.load %arg11[%c0_25, %c0_26, %c0_27] : memref<1x128x128xf32, #tpu.memory_space<vmem>>, vector<1x128x128xf32>
      %44 = vector.shape_cast %43 : vector<1x128x128xf32> to vector<128x128xf32>
      %cst_28 = arith.constant dense<0.000000e+00> : vector<128x128xf32>
      %45 = tpu.matmul %38, %44, %cst_28 {dimension_numbers = #tpu.dot_dimension_numbers<[1], [0], [0], [1], [0, 0, 1, 1], [], []>} : vector<128x128xf32>, vector<128x128xf32>, vector<128x128xf32> -> vector<128x128xf32>
      %46 = arith.addf %42, %45 : vector<128x128xf32>
      %47 = arith.index_cast %3 : i32 to index
      %c0_29 = arith.constant 0 : index
      %48 = vector.load %arg13[%47, %c0_29] : memref<128x128xf32, #tpu.memory_space<vmem>>, vector<128x128xf32>
      tpu.vector_store %arg13[%47, %c0_29], %46 {strides = array<i32>} : memref<128x128xf32, #tpu.memory_space<vmem>>, vector<128x128xf32>,
    } else {
    }
    return
  }
  func.func @transform_0(%arg0: i32, %arg1: i32, %arg2: i32) -> (i32, i32) {
    %c0_i32 = arith.constant 0 : i32
    return %arg1, %arg2 : i32, i32
  }
  func.func @transform_1(%arg0: i32, %arg1: i32, %arg2: i32) -> (i32, i32) {
    %c0_i32 = arith.constant 0 : i32
    %c0_i32_0 = arith.constant 0 : i32
    %c0_i32_1 = arith.constant 0 : i32
    return %c0_i32, %c0_i32_0 : i32, i32
  }
  func.func @transform_2(%arg0: i32, %arg1: i32, %arg2: i32) -> (i32, i32) {
    %c0_i32 = arith.constant 0 : i32
    %c0_i32_0 = arith.constant 0 : i32
    %c0_i32_1 = arith.constant 0 : i32
    return %c0_i32, %c0_i32_0 : i32, i32
  }
  func.func @transform_3(%arg0: i32, %arg1: i32, %arg2: i32) -> (i32, i32) {
    %c0_i32 = arith.constant 0 : i32
    %c0_i32_0 = arith.constant 0 : i32
    %c0_i32_1 = arith.constant 0 : i32
    return %c0_i32, %c0_i32_0 : i32, i32
  }
  func.func @transform_4(%arg0: i32, %arg1: i32, %arg2: i32) -> (i32, i32, i32) {
    %c0_i32 = arith.constant 0 : i32
    %c0_i32_0 = arith.constant 0 : i32
    %c0_i32_1 = arith.constant 0 : i32
    return %arg0, %c0_i32, %c0_i32_0 : i32, i32, i32
  }
  func.func @transform_5(%arg0: i32, %arg1: i32, %arg2: i32) -> (i32, i32, i32) {
    %c0_i32 = arith.constant 0 : i32
    %c0_i32_0 = arith.constant 0 : i32
    %c0_i32_1 = arith.constant 0 : i32
    return %arg0, %c0_i32, %c0_i32_0 : i32, i32, i32
  }
  func.func @transform_6(%arg0: i32, %arg1: i32, %arg2: i32) -> (i32, i32, i32) {
    %c0_i32 = arith.constant 0 : i32
    %c0_i32_0 = arith.constant 0 : i32
    %c0_i32_1 = arith.constant 0 : i32
    return %arg0, %c0_i32, %c0_i32_0 : i32, i32, i32
  }
  func.func @transform_7(%arg0: i32, %arg1: i32, %arg2: i32) -> (i32, i32) {
    %c0_i32 = arith.constant 0 : i32
    %c0_i32_0 = arith.constant 0 : i32
    %c0_i32_1 = arith.constant 0 : i32
    return %c0_i32, %c0_i32_0 : i32, i32
  }
  func.func @transform_8(%arg0: i32, %arg1: i32, %arg2: i32) -> (i32, i32, i32) {
    %c0_i32 = arith.constant 0 : i32
    %c0_i32_0 = arith.constant 0 : i32
    %c0_i32_1 = arith.constant 0 : i32
    return %arg0, %c0_i32, %c0_i32_0 : i32, i32, i32
  }
  func.func @transform_9(%arg0: i32, %arg1: i32, %arg2: i32) -> (i32, i32) {
    %c0_i32 = arith.constant 0 : i32
    %c0_i32_0 = arith.constant 0 : i32
    %c0_i32_1 = arith.constant 0 : i32
    return %c0_i32, %c0_i32_0 : i32, i32
  }
  func.func @transform_10(%arg0: i32, %arg1: i32, %arg2: i32) -> (i32, i32) {
    %c0_i32 = arith.constant 0 : i32
    %c0_i32_0 = arith.constant 0 : i32
    %c0_i32_1 = arith.constant 0 : i32
    return %c0_i32, %c0_i32_0 : i32, i32
  }
}

</mosaic_0001>

<bundles_post_ra>
// kernel: gin_forward.1
= control target key start
LH: loop header
LB: loop body
LE: loop exit
PB: predicated region body
PF: predicated region fallthrough
CT: control target
= control target key end

     0   :  { %s2724_s13 = smov 0   ;;  %s2726_s14 = smov 0   ;;  %s3242_s0 = inlined_call_operand.vmem [shape: s8[128,128], index: 0, kind: input, shape index: {}]   ;;  %s3243_s1 = inlined_call_operand.vmem [shape: f32[128,128], index: 1, kind: input, shape index: {}]   ;;  %s3244_s2 = inlined_call_operand.vmem [shape: f32[128,128], index: 2, kind: input, shape index: {}]   ;;  %s3245_s3 = inlined_call_operand.vmem [shape: f32[1,128], index: 3, kind: input, shape index: {}]   ;;  %s3246_s4 = inlined_call_operand.vmem [shape: f32[2,128,128], index: 4, kind: input, shape index: {}]   ;;  %s3247_s5 = inlined_call_operand.vmem [shape: f32[2,128,128], index: 5, kind: input, shape index: {}]   ;;  %s3248_s6 = inlined_call_operand.vmem [shape: f32[2,1,128], index: 6, kind: input, shape index: {}]   ;;  %s3249_s7 = inlined_call_operand.vmem [shape: f32[128,128], index: 7, kind: input, shape index: {}]   ;;  %s3250_s8 = inlined_call_operand.vmem [shape: f32[2,128,128], index: 8, kind: input, shape index: {}]   ;;  %s3251_s9 = inlined_call_operand.vmem [shape: f32[1,128], index: 9, kind: input, shape index: {}]   ;;  %s3252_s10 = inlined_call_operand.vmem [shape: f32[128,128], index: 10, kind: output, shape index: {}]  }
   0x1   :  { %s2728_s15 = smov 0  }
   0x2 LB: > { %s39_s16 = sadd.s32 1, %s2663_s14  ;;  %p1980_p0 = scmp.ge.s32.totalorder %s2667_s15, 1  ;;  %s2667_s15 = sphi %s2728_s15, %s20_s15   ;;  %s2663_s14 = sphi %s2726_s14, %s3254_s14   ;;  %s2659_s13 = sphi %s2724_s13, %s3253_s13  }
   0x3   : > { %p41_p1 = scmp.ge.s32.totalorder %s39_s16, 2  ;;  %p370_p2 = scmp.lt.s32.totalorder %s2667_s15, 3 }
   0x5   : > { %s3256_s16 = smov (%p41_p1, %s39_s16), 0  ;;  %p371_p3 = pnand %p1980_p0, %p370_p2 }
   0x6   : > { %p433_p4 = scmp.lt.s32.totalorder (!%p371_p3), %s2659_s13, 1  ;;  %p454_p5 = scmp.eq.s32.totalorder (!%p371_p3), %s2659_s13, 0 }
   0x7   : > { %374 = sbr.rel (%p371_p3) target bundleno = 1202 (0x4b2), region = 60 }
   0xc   : > { %s3258_s13 = smov (!%p433_p4, %s2659_s13), 1  ;;  %462 = sbr.rel (!%p454_p5) target bundleno = 469 (0x1d5), region = 64  ;;  %v494_v0 = vld [vmem:[%s3244_s2 + $0x78] sm:$0xff] (%p454_p5)  ;;  %v493_v1 = vld [vmem:[%s3244_s2 + $0x70] sm:$0xff] (%p454_p5)  ;;  %v492_v2 = vld [vmem:[%s3244_s2 + $0x68] sm:$0xff] (%p454_p5) }
   0xd   : > { %s2018_s17 = sshll.u32 %s3258_s13, 7  ;;  %s445_s20 = scalar_lea.vmem %s3248_s6, %s3258_s13  ;;  %2301 = vmatprep.subr.mxu0 (%p454_p5), %v494_v0  ;;  %v491_v3 = vld [vmem:[%s3244_s2 + $0x60] sm:$0xff] (%p454_p5)  ;;  %v490_v5 = vld [vmem:[%s3244_s2 + $0x58] sm:$0xff] (%p454_p5)  ;;  %v489_v6 = vld [vmem:[%s3244_s2 + $0x50] sm:$0xff] (%p454_p5) }
   0xe   : > { %s2752_s23 = scalar_lea.vmem %s3246_s4, %s2018_s17  ;;  %s2757_s26 = scalar_lea.vmem %s3247_s5, %s2018_s17  ;;  %2302 = vmatpush3.msra.mxu0 (%p454_p5), %v494_v0  ;;  %v463_v4 = vld [vmem:[%s3243_s1] sm:$0xff] (%p454_p5)  ;;  %v488_v7 = vld [vmem:[%s3244_s2 + $0x48] sm:$0xff] (%p454_p5)  ;;  %v678_v8 = vld [vmem:[%s3249_s7 + $0x78] sm:$0xff] (%p454_p5) }
   0xf   : > { %s2762_s29 = scalar_lea.vmem %s3250_s8, %s2018_s17  ;;  %2303 = vmatprep.subr.mxu0 (%p454_p5), %v493_v1  ;;  %2333 = vmatprep.mubr.f32.mxu0 (%p454_p5), %v463_v4  ;;  %v677_v9 = vld [vmem:[%s3249_s7 + $0x70] sm:$0xff] (%p454_p5)  ;;  %v487_v10 = vld [vmem:[%s3244_s2 + $0x40] sm:$0xff] (%p454_p5)  ;;  %v676_v11 = vld [vmem:[%s3249_s7 + $0x68] sm:$0xff] (%p454_p5) }
  0x10   : > { %2304 = vmatpush3.msra.mxu0 (%p454_p5), %v493_v1  ;;  %2357 = vmatprep.subr.mxu1 (%p454_p5), %v678_v8  ;;  %v486_v12 = vld [vmem:[%s3244_s2 + $0x38] sm:$0xff] (%p454_p5)  ;;  %v675_v13 = vld [vmem:[%s3249_s7 + $0x60] sm:$0xff] (%p454_p5)  ;;  %v485_v14 = vld [vmem:[%s3244_s2 + $0x30] sm:$0xff] (%p454_p5) }
  0x11   : > { %2305 = vmatprep.subr.mxu0 %v492_v2  ;;  %2358 = vmatpush3.msra.mxu1 %v678_v8  ;;  %v674_v15 = vld [vmem:[%s3249_s7 + $0x58] sm:$0xff]  ;;  %v484_v16 = vld [vmem:[%s3244_s2 + $0x28] sm:$0xff]  ;;  %v673_v17 = vld [vmem:[%s3249_s7 + $0x50] sm:$0xff] }
  0x12   : > { %2306 = vmatpush3.msra.mxu0 %v492_v2  ;;  %2359 = vmatprep.subr.mxu1 %v677_v9  ;;  %v483_v18 = vld [vmem:[%s3244_s2 + $0x20] sm:$0xff]  ;;  %v672_v19 = vld [vmem:[%s3249_s7 + $0x48] sm:$0xff]  ;;  %v482_v20 = vld [vmem:[%s3244_s2 + $0x18] sm:$0xff] }
  0x13   : > { %2307 = vmatprep.subr.mxu0 %v491_v3  ;;  %2360 = vmatpush3.msra.mxu1 %v677_v9  ;;  %v671_v21 = vld [vmem:[%s3249_s7 + $0x40] sm:$0xff]  ;;  %v481_v22 = vld [vmem:[%s3244_s2 + $0x10] sm:$0xff]  ;;  %v670_v23 = vld [vmem:[%s3249_s7 + $0x38] sm:$0xff] }
  0x14   : > { %2308 = vmatpush3.msra.mxu0 %v491_v3  ;;  %2361 = vmatprep.subr.mxu1 %v676_v11  ;;  %v480_v24 = vld [vmem:[%s3244_s2 + $0x8] sm:$0xff]  ;;  %v669_v25 = vld [vmem:[%s3249_s7 + $0x30] sm:$0xff]  ;;  %v479_v26 = vld [vmem:[%s3244_s2] sm:$0xff] }
  0x15   : > { %2309 = vmatprep.subr.mxu0 %v490_v5  ;;  %2362 = vmatpush3.msra.mxu1 %v676_v11  ;;  %v668_v27 = vld [vmem:[%s3249_s7 + $0x28] sm:$0xff]  ;;  %v667_v29 = vld [vmem:[%s3249_s7 + $0x20] sm:$0xff]  ;;  %v465_v30 = vld [vmem:[%s3243_s1 + $0x10] sm:$0xff] }
  0x16   : > { %2310 = vmatpush3.msra.mxu0 %v490_v5  ;;  %2363 = vmatprep.subr.mxu1 %v675_v13  ;;  %v464_v28 = vld [vmem:[%s3243_s1 + $0x8] sm:$0xff]  ;;  %v666_v31 = vld [vmem:[%s3249_s7 + $0x18] sm:$0xff]  ;;  %v467_v33 = vld [vmem:[%s3243_s1 + $0x20] sm:$0xff] }
  0x17   : > { %2311 = vmatprep.subr.mxu0 %v489_v6  ;;  %2364 = vmatpush3.msra.mxu1 %v675_v13  ;;  %v466_v32 = vld [vmem:[%s3243_s1 + $0x18] sm:$0xff]  ;;  %v468_v34 = vld [vmem:[%s3243_s1 + $0x28] sm:$0xff]  ;;  %v469_v35 = vld [vmem:[%s3243_s1 + $0x30] sm:$0xff] }
  0x18   : > { %2312 = vmatpush3.msra.mxu0 %v489_v6  ;;  %2365 = vmatprep.subr.mxu1 %v674_v15  ;;  %v470_v36 = vld [vmem:[%s3243_s1 + $0x38] sm:$0xff]  ;;  %v471_v37 = vld [vmem:[%s3243_s1 + $0x40] sm:$0xff]  ;;  %v472_v38 = vld [vmem:[%s3243_s1 + $0x48] sm:$0xff] }
  0x19   : > { %2313 = vmatprep.subr.mxu0 %v488_v7  ;;  %2366 = vmatpush3.msra.mxu1 %v674_v15  ;;  %v473_v39 = vld [vmem:[%s3243_s1 + $0x50] sm:$0xff]  ;;  %v474_v40 = vld [vmem:[%s3243_s1 + $0x58] sm:$0xff]  ;;  %v475_v41 = vld [vmem:[%s3243_s1 + $0x60] sm:$0xff] }
  0x1a   : > { %2314 = vmatpush3.msra.mxu0 %v488_v7  ;;  %2367 = vmatprep.subr.mxu1 %v673_v17  ;;  %v476_v42 = vld [vmem:[%s3243_s1 + $0x68] sm:$0xff]  ;;  %v477_v43 = vld [vmem:[%s3243_s1 + $0x70] sm:$0xff]  ;;  %v478_v44 = vld [vmem:[%s3243_s1 + $0x78] sm:$0xff] }
  0x1b   : > { %2315 = vmatprep.subr.mxu0 %v487_v10  ;;  %2368 = vmatpush3.msra.mxu1 %v673_v17  ;;  %v665_v45 = vld [vmem:[%s3249_s7 + $0x10] sm:$0xff]  ;;  %v664_v46 = vld [vmem:[%s3249_s7 + $0x8] sm:$0xff]  ;;  %v663_v47 = vld [vmem:[%s3249_s7] sm:$0xff] }
  0x1c   : > { %2316 = vmatpush3.msra.mxu0 %v487_v10  ;;  %2369 = vmatprep.subr.mxu1 %v672_v19  ;;  %v1989_v48 = vld [vmem:[%s3245_s3] ss:$0 sm:$0xff] }
  0x1d   : > { %2317 = vmatprep.subr.mxu0 %v486_v12  ;;  %2370 = vmatpush3.msra.mxu1 %v672_v19  ;;  %v1990_v17 = vld [vmem:[%s3251_s9] ss:$0 sm:$0xff] }
  0x1e   : > { %2318 = vmatpush3.msra.mxu0 %v486_v12  ;;  %2371 = vmatprep.subr.mxu1 %v671_v21 }
  0x1f   : > { %2319 = vmatprep.subr.mxu0 %v485_v14  ;;  %2372 = vmatpush3.msra.mxu1 %v671_v21 }
  0x20   : > { %2320 = vmatpush3.msra.mxu0 %v485_v14  ;;  %2373 = vmatprep.subr.mxu1 %v670_v23 }
  0x21   : > { %2321 = vmatprep.subr.mxu0 %v484_v16  ;;  %2374 = vmatpush3.msra.mxu1 %v670_v23 }
  0x22   : > { %2322 = vmatpush3.msra.mxu0 %v484_v16  ;;  %2375 = vmatprep.subr.mxu1 %v669_v25 }
  0x23   : > { %2323 = vmatprep.subr.mxu0 %v483_v18  ;;  %2376 = vmatpush3.msra.mxu1 %v669_v25 }
  0x24   : > { %2324 = vmatpush3.msra.mxu0 %v483_v18  ;;  %2377 = vmatprep.subr.mxu1 %v668_v27 }
  0x25   : > { %2325 = vmatprep.subr.mxu0 %v482_v20  ;;  %2378 = vmatpush3.msra.mxu1 %v668_v27 }
  0x26   : > { %2326 = vmatpush3.msra.mxu0 %v482_v20  ;;  %2379 = vmatprep.subr.mxu1 %v667_v29 }
  0x27   : > { %2327 = vmatprep.subr.mxu0 %v481_v22  ;;  %2380 = vmatpush3.msra.mxu1 %v667_v29 }
  0x28   : > { %2328 = vmatpush3.msra.mxu0 %v481_v22  ;;  %2381 = vmatprep.subr.mxu1 %v666_v31 }
  0x29   : > { %2329 = vmatprep.subr.mxu0 %v480_v24  ;;  %2382 = vmatpush3.msra.mxu1 %v666_v31 }
  0x2a   : > { %2330 = vmatpush3.msra.mxu0 %v480_v24  ;;  %2383 = vmatprep.subr.mxu1 %v665_v45 }
  0x2b   : > { %2331 = vmatprep.subr.mxu0 %v479_v26  ;;  %2384 = vmatpush3.msra.mxu1 %v665_v45 }
  0x2c   : > { %2332 = vmatpush3.msra.mxu0 %v479_v26  ;;  %2385 = vmatprep.subr.mxu1 %v664_v46 }
  0x2d   : > { %2334 = vmatmul.mubr.f32.vlgmr.msra.gmra.mxu0 %v464_v28  ;;  %2386 = vmatpush3.msra.mxu1 %v664_v46 }
  0x2e   : > { %2336 = vmatprep.mubr.f32.mxu0 %v465_v30  ;;  %2387 = vmatprep.subr.mxu1 %v663_v47 }
  0x2f   : > { %2388 = vmatpush3.msra.mxu1 %v663_v47 }
  0x31   : > { %2337 = vmatmul.mubr.f32.gmra.mxu0 %v466_v32 }
  0x32   : > { %2339 = vmatprep.mubr.f32.mxu0 %v467_v33 }
  0x35   : > { %2340 = vmatmul.mubr.f32.gmra.mxu0 %v468_v34 }
  0x36   : > { %2342 = vmatprep.mubr.f32.mxu0 %v469_v35 }
  0x39   : > { %2343 = vmatmul.mubr.f32.gmra.mxu0 %v470_v36 }
  0x3a   : > { %2345 = vmatprep.mubr.f32.mxu0 %v471_v37 }
  0x3d   : > { %2346 = vmatmul.mubr.f32.gmra.mxu0 %v472_v38 }
  0x3e   : > { %2348 = vmatprep.mubr.f32.mxu0 %v473_v39 }
  0x41   : > { %2349 = vmatmul.mubr.f32.gmra.mxu0 %v474_v40 }
  0x42   : > { %2351 = vmatprep.mubr.f32.mxu0 %v475_v41 }
  0x45   : > { %2352 = vmatmul.mubr.f32.gmra.mxu0 %v476_v42 }
  0x46   : > { %2354 = vmatprep.mubr.f32.mxu0 %v477_v43 }
  0x49   : > { %2355 = vmatmul.mubr.f32.gmra.mxu0 %v478_v44 }
  0xed   : > { %v2335_v49 = vpop.f32.mrf.mxu0 }
  0xee   : > { %v574_v50 = vadd.f32 %v2335_v49, %v1989_v48 }
  0xef   : > { %v568_v51 = vpop.f32.mrf.mxu0 }
  0xf0   : > { %648 = vst [vmem:[#allocation2] sm:$0xff] %v574_v50  ;;  %v569_v52 = vadd.f32 %v1989_v48, %v568_v51 }
  0xf1   : > { %v2338_v53 = vpop.f32.mrf.mxu0 }
  0xf2   : > { %647 = vst [vmem:[#allocation2 + $0x30] sm:$0xff] %v569_v52  ;;  %v584_v54 = vadd.f32 %v2338_v53, %v1989_v48  ;;  %2389 = vmatprep.mubr.f32.mxu1 %v569_v52 }
  0xf3   : > { %v578_v55 = vpop.f32.mrf.mxu0  ;;  %2390 = vmatmul.mubr.f32.vlgmr.msra.gmra.mxu1 %v574_v50 }
  0xf4   : > { %650 = vst [vmem:[#allocation2 + $0x18] sm:$0xff] %v584_v54  ;;  %v579_v56 = vadd.f32 %v1989_v48, %v578_v55 }
  0xf5   : > { %v2341_v57 = vpop.f32.mrf.mxu0 }
  0xf6   : > { %649 = vst [vmem:[#allocation2 + $0x58] sm:$0xff] %v579_v56  ;;  %v594_v58 = vadd.f32 %v2341_v57, %v1989_v48  ;;  %2392 = vmatprep.mubr.f32.mxu1 %v579_v56 }
  0xf7   : > { %v588_v59 = vpop.f32.mrf.mxu0  ;;  %2393 = vmatmul.mubr.f32.gmra.mxu1 %v584_v54 }
  0xf8   : > { %652 = vst [vmem:[#allocation2 + $0x68] sm:$0xff] %v594_v58  ;;  %v589_v60 = vadd.f32 %v1989_v48, %v588_v59 }
  0xf9   : > { %v2344_v61 = vpop.f32.mrf.mxu0 }
  0xfa   : > { %651 = vst [vmem:[#allocation2 + $0x50] sm:$0xff] %v589_v60  ;;  %v604_v62 = vadd.f32 %v2344_v61, %v1989_v48  ;;  %2395 = vmatprep.mubr.f32.mxu1 %v589_v60 }
  0xfb   : > { %v598_v63 = vpop.f32.mrf.mxu0  ;;  %2396 = vmatmul.mubr.f32.gmra.mxu1 %v594_v58 }
  0xfc   : > { %654 = vst [vmem:[#allocation2 + $0x48] sm:$0xff] %v604_v62  ;;  %v599_v0 = vadd.f32 %v1989_v48, %v598_v63 }
  0xfd   : > { %v2347_v1 = vpop.f32.mrf.mxu0 }
  0xfe   : > { %653 = vst [vmem:[#allocation2 + $0x8] sm:$0xff] %v599_v0  ;;  %v614_v2 = vadd.f32 %v2347_v1, %v1989_v48  ;;  %2398 = vmatprep.mubr.f32.mxu1 %v599_v0 }
  0xff   : > { %v608_v3 = vpop.f32.mrf.mxu0  ;;  %2399 = vmatmul.mubr.f32.gmra.mxu1 %v604_v62 }
 0x100   : > { %656 = vst [vmem:[#allocation2 + $0x20] sm:$0xff] %v614_v2  ;;  %v609_v4 = vadd.f32 %v1989_v48, %v608_v3 }
 0x101   : > { %v2350_v5 = vpop.f32.mrf.mxu0 }
 0x102   : > { %655 = vst [vmem:[#allocation2 + $0x40] sm:$0xff] %v609_v4  ;;  %v624_v6 = vadd.f32 %v2350_v5, %v1989_v48  ;;  %2401 = vmatprep.mubr.f32.mxu1 %v609_v4 }
 0x103   : > { %v618_v7 = vpop.f32.mrf.mxu0  ;;  %2402 = vmatmul.mubr.f32.gmra.mxu1 %v614_v2 }
 0x104   : > { %658 = vst [vmem:[#allocation2 + $0x38] sm:$0xff] %v624_v6  ;;  %v619_v8 = vadd.f32 %v1989_v48, %v618_v7 }
 0x105   : > { %v2353_v9 = vpop.f32.mrf.mxu0 }
 0x106   : > { %657 = vst [vmem:[#allocation2 + $0x10] sm:$0xff] %v619_v8  ;;  %v634_v10 = vadd.f32 %v2353_v9, %v1989_v48  ;;  %2404 = vmatprep.mubr.f32.mxu1 %v619_v8 }
 0x107   : > { %v628_v11 = vpop.f32.mrf.mxu0  ;;  %2405 = vmatmul.mubr.f32.gmra.mxu1 %v624_v6 }
 0x108   : > { %660 = vst [vmem:[#allocation2 + $0x70] sm:$0xff] %v634_v10  ;;  %v629_v12 = vadd.f32 %v1989_v48, %v628_v11 }
 0x109   : > { %v2356_v13 = vpop.f32.mrf.mxu0 }
 0x10a   : > { %659 = vst [vmem:[#allocation2 + $0x60] sm:$0xff] %v629_v12  ;;  %v644_v14 = vadd.f32 %v2356_v13, %v1989_v48  ;;  %2407 = vmatprep.mubr.f32.mxu1 %v629_v12 }
 0x10b   : > { %v638_v15 = vpop.f32.mrf.mxu0  ;;  %2408 = vmatmul.mubr.f32.gmra.mxu1 %v634_v10 }
 0x10c   : > { %662 = vst [vmem:[#allocation2 + $0x28] sm:$0xff] %v644_v14  ;;  %v639_v16 = vadd.f32 %v1989_v48, %v638_v15 }
 0x10e   : > { %661 = vst [vmem:[#allocation2 + $0x78] sm:$0xff] %v639_v16  ;;  %2410 = vmatprep.mubr.f32.mxu1 %v639_v16 }
 0x10f   : > { %2411 = vmatmul.mubr.f32.gmra.mxu1 %v644_v14 }
 0x1b3   : > { %v2391_v18 = vpop.f32.mrf.mxu1 }
 0x1b4   : > { %v758_v19 = vadd.f32 %v2391_v18, %v1990_v17 }
 0x1b5   : > { %v752_v20 = vpop.f32.mrf.mxu1 }
 0x1b6   : > { %832 = vst [vmem:[%s3252_s10 + $0x8] sm:$0xff] %v758_v19  ;;  %v753_v21 = vadd.f32 %v1990_v17, %v752_v20 }
 0x1b7   : > { %v2394_v22 = vpop.f32.mrf.mxu1 }
 0x1b8   : > { %831 = vst [vmem:[%s3252_s10] sm:$0xff] %v753_v21  ;;  %v768_v23 = vadd.f32 %v2394_v22, %v1990_v17 }
 0x1b9   : > { %v762_v24 = vpop.f32.mrf.mxu1 }
 0x1ba   : > { %834 = vst [vmem:[%s3252_s10 + $0x18] sm:$0xff] %v768_v23  ;;  %v763_v25 = vadd.f32 %v1990_v17, %v762_v24 }
 0x1bb   : > { %v2397_v26 = vpop.f32.mrf.mxu1 }
 0x1bc   : > { %833 = vst [vmem:[%s3252_s10 + $0x10] sm:$0xff] %v763_v25  ;;  %v778_v27 = vadd.f32 %v2397_v26, %v1990_v17 }
 0x1bd   : > { %v772_v28 = vpop.f32.mrf.mxu1 }
 0x1be   : > { %836 = vst [vmem:[%s3252_s10 + $0x28] sm:$0xff] %v778_v27  ;;  %v773_v29 = vadd.f32 %v1990_v17, %v772_v28 }
 0x1bf   : > { %v2400_v30 = vpop.f32.mrf.mxu1 }
 0x1c0   : > { %835 = vst [vmem:[%s3252_s10 + $0x20] sm:$0xff] %v773_v29  ;;  %v788_v31 = vadd.f32 %v2400_v30, %v1990_v17 }
 0x1c1   : > { %v782_v32 = vpop.f32.mrf.mxu1 }
 0x1c2   : > { %838 = vst [vmem:[%s3252_s10 + $0x38] sm:$0xff] %v788_v31  ;;  %v783_v33 = vadd.f32 %v1990_v17, %v782_v32 }
 0x1c3   : > { %v2403_v34 = vpop.f32.mrf.mxu1 }
 0x1c4   : > { %837 = vst [vmem:[%s3252_s10 + $0x30] sm:$0xff] %v783_v33  ;;  %v798_v35 = vadd.f32 %v2403_v34, %v1990_v17 }
 0x1c5   : > { %v792_v36 = vpop.f32.mrf.mxu1 }
 0x1c6   : > { %840 = vst [vmem:[%s3252_s10 + $0x48] sm:$0xff] %v798_v35  ;;  %v793_v37 = vadd.f32 %v1990_v17, %v792_v36 }
 0x1c7   : > { %v2406_v38 = vpop.f32.mrf.mxu1 }
 0x1c8   : > { %839 = vst [vmem:[%s3252_s10 + $0x40] sm:$0xff] %v793_v37  ;;  %v808_v39 = vadd.f32 %v2406_v38, %v1990_v17 }
 0x1c9   : > { %v802_v40 = vpop.f32.mrf.mxu1 }
 0x1ca   : > { %842 = vst [vmem:[%s3252_s10 + $0x58] sm:$0xff] %v808_v39  ;;  %v803_v41 = vadd.f32 %v1990_v17, %v802_v40 }
 0x1cb   : > { %v2409_v42 = vpop.f32.mrf.mxu1 }
 0x1cc   : > { %841 = vst [vmem:[%s3252_s10 + $0x50] sm:$0xff] %v803_v41  ;;  %v818_v43 = vadd.f32 %v2409_v42, %v1990_v17 }
 0x1cd   : > { %v812_v44 = vpop.f32.mrf.mxu1 }
 0x1ce   : > { %844 = vst [vmem:[%s3252_s10 + $0x68] sm:$0xff] %v818_v43  ;;  %v813_v45 = vadd.f32 %v1990_v17, %v812_v44 }
 0x1cf   : > { %v2412_v46 = vpop.f32.mrf.mxu1 }
 0x1d0   : > { %843 = vst [vmem:[%s3252_s10 + $0x60] sm:$0xff] %v813_v45  ;;  %v828_v47 = vadd.f32 %v2412_v46, %v1990_v17 }
 0x1d1   : > { %v822_v48 = vpop.f32.mrf.mxu1 }
 0x1d2   : > { %846 = vst [vmem:[%s3252_s10 + $0x78] sm:$0xff] %v828_v47  ;;  %v823_v49 = vadd.f32 %v1990_v17, %v822_v48 }
 0x1d4   : > { %845 = vst [vmem:[%s3252_s10 + $0x70] sm:$0xff] %v823_v49 }
 0x1d5 PF: > { %v915_v50 = vld [vmem:[%s2757_s26 + $0x78] sm:$0xff]  ;;  %v914_v52 = vld [vmem:[%s2757_s26 + $0x70] sm:$0xff]  ;;  %v913_v54 = vld [vmem:[%s2757_s26 + $0x68] sm:$0xff] }
 0x1d6   : > { %v882_v51 = vld [vmem:[%s2752_s23 + $0x78] sm:$0xff]  ;;  %2413 = vmatprep.subr.mxu0 %v915_v50  ;;  %v881_v53 = vld [vmem:[%s2752_s23 + $0x70] sm:$0xff]  ;;  %v880_v55 = vld [vmem:[%s2752_s23 + $0x68] sm:$0xff] }
 0x1d7   : > { %2469 = vmatprep.subr.mxu1 %v882_v51  ;;  %2414 = vmatpush3.msra.mxu0 %v915_v50  ;;  %v912_v56 = vld [vmem:[%s2757_s26 + $0x60] sm:$0xff]  ;;  %v911_v58 = vld [vmem:[%s2757_s26 + $0x58] sm:$0xff]  ;;  %v910_v60 = vld [vmem:[%s2757_s26 + $0x50] sm:$0xff] }
 0x1d8   : > { %2470 = vmatpush3.msra.mxu1 %v882_v51  ;;  %2415 = vmatprep.subr.mxu0 %v914_v52  ;;  %v879_v57 = vld [vmem:[%s2752_s23 + $0x60] sm:$0xff]  ;;  %v878_v59 = vld [vmem:[%s2752_s23 + $0x58] sm:$0xff]  ;;  %v877_v61 = vld [vmem:[%s2752_s23 + $0x50] sm:$0xff] }
 0x1d9   : > { %2471 = vmatprep.subr.mxu1 %v881_v53  ;;  %2416 = vmatpush3.msra.mxu0 %v914_v52  ;;  %v909_v62 = vld [vmem:[%s2757_s26 + $0x48] sm:$0xff]  ;;  %v908_v0 = vld [vmem:[%s2757_s26 + $0x40] sm:$0xff]  ;;  %v907_v2 = vld [vmem:[%s2757_s26 + $0x38] sm:$0xff] }
 0x1da   : > { %2472 = vmatpush3.msra.mxu1 %v881_v53  ;;  %2417 = vmatprep.subr.mxu0 %v913_v54  ;;  %v876_v63 = vld [vmem:[%s2752_s23 + $0x48] sm:$0xff]  ;;  %v875_v1 = vld [vmem:[%s2752_s23 + $0x40] sm:$0xff]  ;;  %v874_v3 = vld [vmem:[%s2752_s23 + $0x38] sm:$0xff] }
 0x1db   : > { %2473 = vmatprep.subr.mxu1 %v880_v55  ;;  %2418 = vmatpush3.msra.mxu0 %v913_v54  ;;  %v906_v4 = vld [vmem:[%s2757_s26 + $0x30] sm:$0xff]  ;;  %v905_v6 = vld [vmem:[%s2757_s26 + $0x28] sm:$0xff]  ;;  %v904_v8 = vld [vmem:[%s2757_s26 + $0x20] sm:$0xff] }
 0x1dc   : > { %2474 = vmatpush3.msra.mxu1 %v880_v55  ;;  %2419 = vmatprep.subr.mxu0 %v912_v56  ;;  %v873_v5 = vld [vmem:[%s2752_s23 + $0x30] sm:$0xff]  ;;  %v872_v7 = vld [vmem:[%s2752_s23 + $0x28] sm:$0xff]  ;;  %v871_v9 = vld [vmem:[%s2752_s23 + $0x20] sm:$0xff] }
 0x1dd   : > { %2475 = vmatprep.subr.mxu1 %v879_v57  ;;  %2420 = vmatpush3.msra.mxu0 %v912_v56  ;;  %v903_v10 = vld [vmem:[%s2757_s26 + $0x18] sm:$0xff]  ;;  %v902_v12 = vld [vmem:[%s2757_s26 + $0x10] sm:$0xff]  ;;  %v901_v14 = vld [vmem:[%s2757_s26 + $0x8] sm:$0xff] }
 0x1de   : > { %2476 = vmatpush3.msra.mxu1 %v879_v57  ;;  %2421 = vmatprep.subr.mxu0 %v911_v58  ;;  %v870_v11 = vld [vmem:[%s2752_s23 + $0x18] sm:$0xff]  ;;  %v869_v13 = vld [vmem:[%s2752_s23 + $0x10] sm:$0xff]  ;;  %v868_v15 = vld [vmem:[%s2752_s23 + $0x8] sm:$0xff] }
 0x1df   : > { %2477 = vmatprep.subr.mxu1 %v878_v59  ;;  %2422 = vmatpush3.msra.mxu0 %v911_v58  ;;  %v900_v16 = vld [vmem:[%s2757_s26] sm:$0xff]  ;;  %v851_v19 = vld [vmem:[#allocation2 + $0x30] sm:$0xff]  ;;  %v885_v20 = vld [vmem:[%s3243_s1 + $0x8] sm:$0xff] }
 0x1e0   : > { %2478 = vmatpush3.msra.mxu1 %v878_v59  ;;  %2423 = vmatprep.subr.mxu0 %v910_v60  ;;  %v867_v17 = vld [vmem:[%s2752_s23] sm:$0xff]  ;;  %v886_v22 = vld [vmem:[%s3243_s1 + $0x10] sm:$0xff]  ;;  %v853_v23 = vld [vmem:[#allocation2 + $0x58] sm:$0xff] }
 0x1e1   : > { %2479 = vmatprep.subr.mxu1 %v877_v61  ;;  %2424 = vmatpush3.msra.mxu0 %v910_v60  ;;  %v884_v18 = vld [vmem:[%s3243_s1] sm:$0xff]  ;;  %v887_v24 = vld [vmem:[%s3243_s1 + $0x18] sm:$0xff]  ;;  %v855_v27 = vld [vmem:[#allocation2 + $0x50] sm:$0xff] }
 0x1e2   : > { %2480 = vmatpush3.msra.mxu1 %v877_v61  ;;  %2425 = vmatprep.subr.mxu0 %v909_v62  ;;  %v852_v21 = vld [vmem:[#allocation2] sm:$0xff]  ;;  %v854_v25 = vld [vmem:[#allocation2 + $0x18] sm:$0xff]  ;;  %v889_v28 = vld [vmem:[%s3243_s1 + $0x28] sm:$0xff] }
 0x1e3   : > { %2481 = vmatprep.subr.mxu1 %v876_v63  ;;  %2426 = vmatpush3.msra.mxu0 %v909_v62  ;;  %v888_v26 = vld [vmem:[%s3243_s1 + $0x20] sm:$0xff]  ;;  %v856_v29 = vld [vmem:[#allocation2 + $0x68] sm:$0xff]  ;;  %v890_v30 = vld [vmem:[%s3243_s1 + $0x30] sm:$0xff] }
 0x1e4   : > { %2482 = vmatpush3.msra.mxu1 %v876_v63  ;;  %2427 = vmatprep.subr.mxu0 %v908_v0  ;;  %v857_v31 = vld [vmem:[#allocation2 + $0x8] sm:$0xff]  ;;  %v891_v32 = vld [vmem:[%s3243_s1 + $0x38] sm:$0xff]  ;;  %v892_v34 = vld [vmem:[%s3243_s1 + $0x40] sm:$0xff] }
 0x1e5   : > { %2483 = vmatprep.subr.mxu1 %v875_v1  ;;  %2428 = vmatpush3.msra.mxu0 %v908_v0  ;;  %v858_v33 = vld [vmem:[#allocation2 + $0x48] sm:$0xff]  ;;  %v859_v35 = vld [vmem:[#allocation2 + $0x40] sm:$0xff]  ;;  %v894_v38 = vld [vmem:[%s3243_s1 + $0x50] sm:$0xff] }
 0x1e6   : > { %2484 = vmatpush3.msra.mxu1 %v875_v1  ;;  %2429 = vmatprep.subr.mxu0 %v907_v2  ;;  %v893_v36 = vld [vmem:[%s3243_s1 + $0x48] sm:$0xff]  ;;  %v860_v37 = vld [vmem:[#allocation2 + $0x20] sm:$0xff]  ;;  %v861_v39 = vld [vmem:[#allocation2 + $0x10] sm:$0xff] }
 0x1e7   : > { %2485 = vmatprep.subr.mxu1 %v874_v3  ;;  %2430 = vmatpush3.msra.mxu0 %v907_v2  ;;  %v895_v40 = vld [vmem:[%s3243_s1 + $0x58] sm:$0xff]  ;;  %v896_v42 = vld [vmem:[%s3243_s1 + $0x60] sm:$0xff]  ;;  %v897_v44 = vld [vmem:[%s3243_s1 + $0x68] sm:$0xff] }
 0x1e8   : > { %2486 = vmatpush3.msra.mxu1 %v874_v3  ;;  %2431 = vmatprep.subr.mxu0 %v906_v4  ;;  %v862_v41 = vld [vmem:[#allocation2 + $0x38] sm:$0xff]  ;;  %v863_v43 = vld [vmem:[#allocation2 + $0x60] sm:$0xff]  ;;  %v864_v45 = vld [vmem:[#allocation2 + $0x70] sm:$0xff] }
 0x1e9   : > { %2487 = vmatprep.subr.mxu1 %v873_v5  ;;  %2432 = vmatpush3.msra.mxu0 %v906_v4  ;;  %v898_v46 = vld [vmem:[%s3243_s1 + $0x70] sm:$0xff]  ;;  %v865_v47 = vld [vmem:[#allocation2 + $0x78] sm:$0xff]  ;;  %v866_v49 = vld [vmem:[#allocation2 + $0x28] sm:$0xff] }
 0x1ea   : > { %2488 = vmatpush3.msra.mxu1 %v873_v5  ;;  %2433 = vmatprep.subr.mxu0 %v905_v6  ;;  %v899_v48 = vld [vmem:[%s3243_s1 + $0x78] sm:$0xff]  ;;  %v3045_v50 = vld [vmem:[%s3242_s0] sm:$0xff]  ;;  %v1692_v53 = vld [vmem:[%s2762_s29 + $0x70] sm:$0xff] }
 0x1eb   : > { %2489 = vmatprep.subr.mxu1 %v872_v7  ;;  %2434 = vmatpush3.msra.mxu0 %v905_v6  ;;  %v1329_v51 = vunpack.c.l.s8.bf16 %v3045_v50  ;;  %v1693_v52 = vld [vmem:[%s2762_s29 + $0x78] sm:$0xff]  ;;  %v1691_v54 = vld [vmem:[%s2762_s29 + $0x68] sm:$0xff]  ;;  %v1690_v55 = vld [vmem:[%s2762_s29 + $0x60] sm:$0xff] }
 0x1ec   : > { %2490 = vmatpush3.msra.mxu1 %v872_v7  ;;  %2435 = vmatprep.subr.mxu0 %v904_v8  ;;  %v1689_v56 = vld [vmem:[%s2762_s29 + $0x58] sm:$0xff]  ;;  %v1688_v57 = vld [vmem:[%s2762_s29 + $0x50] sm:$0xff]  ;;  %v1687_v58 = vld [vmem:[%s2762_s29 + $0x48] sm:$0xff] }
 0x1ed   : > { %2491 = vmatprep.subr.mxu1 %v871_v9  ;;  %2436 = vmatpush3.msra.mxu0 %v904_v8  ;;  %v1686_v59 = vld [vmem:[%s2762_s29 + $0x40] sm:$0xff]  ;;  %v1685_v60 = vld [vmem:[%s2762_s29 + $0x38] sm:$0xff]  ;;  %v1684_v61 = vld [vmem:[%s2762_s29 + $0x30] sm:$0xff] }
 0x1ee   : > { %2492 = vmatpush3.msra.mxu1 %v871_v9  ;;  %2437 = vmatprep.subr.mxu0 %v903_v10 }
 0x1ef   : > { %2493 = vmatprep.subr.mxu1 %v870_v11  ;;  %2438 = vmatpush3.msra.mxu0 %v903_v10 }
 0x1f0   : > { %2494 = vmatpush3.msra.mxu1 %v870_v11  ;;  %2439 = vmatprep.subr.mxu0 %v902_v12 }
 0x1f1   : > { %2495 = vmatprep.subr.mxu1 %v869_v13  ;;  %2440 = vmatpush3.msra.mxu0 %v902_v12 }
 0x1f2   : > { %2496 = vmatpush3.msra.mxu1 %v869_v13  ;;  %2441 = vmatprep.subr.mxu0 %v901_v14 }
 0x1f3   : > { %2497 = vmatprep.subr.mxu1 %v868_v15  ;;  %2442 = vmatpush3.msra.mxu0 %v901_v14 }
 0x1f4   : > { %2498 = vmatpush3.msra.mxu1 %v868_v15  ;;  %2443 = vmatprep.subr.mxu0 %v900_v16 }
 0x1f5   : > { %2499 = vmatprep.subr.mxu1 %v867_v17  ;;  %2444 = vmatpush3.msra.mxu0 %v900_v16 }
 0x1f6   : > { %2445 = vmatprep.mubr.f32.mxu0 %v884_v18  ;;  %2500 = vmatpush3.msra.mxu1 %v867_v17 }
 0x1f7   : > { %2501 = vmatprep.mubr.f32.mxu1 %v851_v19  ;;  %2446 = vmatmul.mubr.f32.vlgmr.msra.gmra.mxu0 %v885_v20 }
 0x1f8   : > { %2502 = vmatmul.mubr.f32.vlgmr.msra.gmra.mxu1 %v852_v21  ;;  %2448 = vmatprep.mubr.f32.mxu0 %v886_v22 }
 0x1f9   : > { %2504 = vmatprep.mubr.f32.mxu1 %v853_v23  ;;  %2557 = vmatprep.subr.mxu1 %v1693_v52 }
 0x1fa   : > { %2558 = vmatpush3.msra.mxu1 %v1693_v52 }
 0x1fb   : > { %2449 = vmatmul.mubr.f32.gmra.mxu0 %v887_v24  ;;  %2559 = vmatprep.subr.mxu1 %v1692_v53 }
 0x1fc   : > { %2505 = vmatmul.mubr.f32.gmra.mxu1 %v854_v25  ;;  %2451 = vmatprep.mubr.f32.mxu0 %v888_v26 }
 0x1fd   : > { %2507 = vmatprep.mubr.f32.mxu1 %v855_v27  ;;  %2560 = vmatpush3.msra.mxu1 %v1692_v53 }
 0x1fe   : > { %2561 = vmatprep.subr.mxu1 %v1691_v54 }
 0x1ff   : > { %2452 = vmatmul.mubr.f32.gmra.mxu0 %v889_v28  ;;  %2562 = vmatpush3.msra.mxu1 %v1691_v54 }
 0x200   : > { %2508 = vmatmul.mubr.f32.gmra.mxu1 %v856_v29  ;;  %2454 = vmatprep.mubr.f32.mxu0 %v890_v30 }
 0x201   : > { %2510 = vmatprep.mubr.f32.mxu1 %v857_v31  ;;  %2563 = vmatprep.subr.mxu1 %v1690_v55 }
 0x202   : > { %2564 = vmatpush3.msra.mxu1 %v1690_v55 }
 0x203   : > { %2455 = vmatmul.mubr.f32.gmra.mxu0 %v891_v32  ;;  %2565 = vmatprep.subr.mxu1 %v1689_v56 }
 0x204   : > { %2511 = vmatmul.mubr.f32.gmra.mxu1 %v858_v33  ;;  %2457 = vmatprep.mubr.f32.mxu0 %v892_v34 }
 0x205   : > { %2513 = vmatprep.mubr.f32.mxu1 %v859_v35  ;;  %2566 = vmatpush3.msra.mxu1 %v1689_v56 }
 0x206   : > { %2567 = vmatprep.subr.mxu1 %v1688_v57 }
 0x207   : > { %2458 = vmatmul.mubr.f32.gmra.mxu0 %v893_v36  ;;  %2568 = vmatpush3.msra.mxu1 %v1688_v57 }
 0x208   : > { %2514 = vmatmul.mubr.f32.gmra.mxu1 %v860_v37  ;;  %2460 = vmatprep.mubr.f32.mxu0 %v894_v38 }
 0x209   : > { %2516 = vmatprep.mubr.f32.mxu1 %v861_v39  ;;  %2569 = vmatprep.subr.mxu1 %v1687_v58 }
 0x20a   : > { %2570 = vmatpush3.msra.mxu1 %v1687_v58 }
 0x20b   : > { %2461 = vmatmul.mubr.f32.gmra.mxu0 %v895_v40  ;;  %2571 = vmatprep.subr.mxu1 %v1686_v59 }
 0x20c   : > { %2517 = vmatmul.mubr.f32.gmra.mxu1 %v862_v41  ;;  %2463 = vmatprep.mubr.f32.mxu0 %v896_v42 }
 0x20d   : > { %2519 = vmatprep.mubr.f32.mxu1 %v863_v43  ;;  %2572 = vmatpush3.msra.mxu1 %v1686_v59 }
 0x20e   : > { %2573 = vmatprep.subr.mxu1 %v1685_v60 }
 0x20f   : > { %2464 = vmatmul.mubr.f32.gmra.mxu0 %v897_v44  ;;  %2574 = vmatpush3.msra.mxu1 %v1685_v60 }
 0x210   : > { %2520 = vmatmul.mubr.f32.gmra.mxu1 %v864_v45  ;;  %2466 = vmatprep.mubr.f32.mxu0 %v898_v46 }
 0x211   : > { %2522 = vmatprep.mubr.f32.mxu1 %v865_v47  ;;  %2575 = vmatprep.subr.mxu1 %v1684_v61 }
 0x212   : > { %2576 = vmatpush3.msra.mxu1 %v1684_v61 }
 0x213   : > { %2467 = vmatmul.mubr.f32.gmra.mxu0 %v899_v48 }
 0x214   : > { %2523 = vmatmul.mubr.f32.gmra.mxu1 %v866_v49  ;;  %2541 = vmatprep.mubr.bf16.mxu0 %v1329_v51 }
 0x2b7   : > { %v2447_v62 = vpop.f32.mrf.mxu0 }
 0x2b8   : > { %v2503_v63 = vpop.f32.mrf.mxu1 }
 0x2b9   : > { %v982_v0 = vpop.f32.mrf.mxu0  ;;  %v1133_v2 = vadd.f32 %v2503_v63, %v2447_v62  ;;  %v1326_v63 = vld [vmem:[%s3242_s0 + $0x8] sm:$0xff] }
 0x2ba   : > { %v1127_v1 = vpop.f32.mrf.mxu1 }
 0x2bb   : > { %v1128_v3 = vadd.f32 %v1127_v1, %v982_v0  ;;  %v2450_v4 = vpop.f32.mrf.mxu0  ;;  %v1330_v0 = vunpack.c.h.s8.bf16 %v3045_v50  ;;  %v1331_v1 = vunpack.c.l.s8.bf16 %v1326_v63 }
 0x2bc   : > { %v2506_v5 = vpop.f32.mrf.mxu1 }
 0x2bd   : > { %v3058_v6 = vpack.c.bf16 %v1133_v2, %v1128_v3  ;;  %v992_v7 = vpop.f32.mrf.mxu0  ;;  %v1143_v9 = vadd.f32 %v2506_v5, %v2450_v4  ;;  %v1327_v2 = vld [vmem:[%s3242_s0 + $0x10] sm:$0xff]  ;;  %v1332_v3 = vunpack.c.h.s8.bf16 %v1326_v63  ;;  %v1328_v5 = vld [vmem:[%s3242_s0 + $0x18] sm:$0xff] }
 0x2be   : > { %v1137_v8 = vpop.f32.mrf.mxu1  ;;  %v1333_v4 = vunpack.c.l.s8.bf16 %v1327_v2  ;;  %v1334_v50 = vunpack.c.h.s8.bf16 %v1327_v2 }
 0x2bf   : > { %2043 = vst [vmem:[#allocation3] sm:$0xff] %v3058_v6   ;;  %v1138_v10 = vadd.f32 %v1137_v8, %v992_v7  ;;  %v2453_v11 = vpop.f32.mrf.mxu0  ;;  %v1335_v7 = vunpack.c.l.s8.bf16 %v1328_v5  ;;  %v1336_v8 = vunpack.c.h.s8.bf16 %v1328_v5 }
 0x2c0   : > { %v2509_v12 = vpop.f32.mrf.mxu1 }
 0x2c1   : > { %v3061_v13 = vpack.c.bf16 %v1143_v9, %v1138_v10  ;;  %v1002_v14 = vpop.f32.mrf.mxu0  ;;  %v1153_v16 = vadd.f32 %v2509_v12, %v2453_v11  ;;  %v1683_v9 = vld [vmem:[%s2762_s29 + $0x28] sm:$0xff]  ;;  %v1682_v10 = vld [vmem:[%s2762_s29 + $0x20] sm:$0xff]  ;;  %v1681_v11 = vld [vmem:[%s2762_s29 + $0x18] sm:$0xff] }
 0x2c2   : > { %v1147_v15 = vpop.f32.mrf.mxu1  ;;  %2577 = vmatprep.subr.mxu1 %v1683_v9  ;;  %v1680_v12 = vld [vmem:[%s2762_s29 + $0x10] sm:$0xff] }
 0x2c3   : > { %2111 = vst [vmem:[#allocation3 + $0x8] sm:$0xff] %v3061_v13   ;;  %v1148_v17 = vadd.f32 %v1147_v15, %v1002_v14  ;;  %v2456_v18 = vpop.f32.mrf.mxu0  ;;  %2578 = vmatpush3.msra.mxu1 %v1683_v9  ;;  %v1679_v14 = vld [vmem:[%s2762_s29 + $0x8] sm:$0xff]  ;;  %v1678_v15 = vld [vmem:[%s2762_s29] sm:$0xff] }
 0x2c4   : > { %v2512_v19 = vpop.f32.mrf.mxu1  ;;  %2579 = vmatprep.subr.mxu1 %v1682_v10 }
 0x2c5   : > { %v3064_v20 = vpack.c.bf16 %v1153_v16, %v1148_v17  ;;  %v1012_v21 = vpop.f32.mrf.mxu0  ;;  %v1163_v23 = vadd.f32 %v2512_v19, %v2456_v18  ;;  %2580 = vmatpush3.msra.mxu1 %v1682_v10  ;;  %v2085_v16 = vunpack.c.l.bf16 %v3061_v13  ;;  %v3104_v18 = vld [vmem:[%s445_s20] ss:$0 sm:$0xff] }
 0x2c6   : > { %v1157_v22 = vpop.f32.mrf.mxu1  ;;  %v2644_v62 = vld [vmem:[#allocation3] sm:$0xff]   ;;  %2581 = vmatprep.subr.mxu1 %v1681_v11 }
 0x2c7   : > { %2112 = vst [vmem:[#allocation3 + $0x10] sm:$0xff] %v3064_v20   ;;  %v1158_v24 = vadd.f32 %v1157_v22, %v1012_v21  ;;  %v2459_v25 = vpop.f32.mrf.mxu0  ;;  %2582 = vmatpush3.msra.mxu1 %v1681_v11  ;;  %v2081_v21 = vunpack.c.l.bf16 %v3058_v6 }
 0x2c8   : > { %v2515_v26 = vpop.f32.mrf.mxu1  ;;  %2583 = vmatprep.subr.mxu1 %v1680_v12 }
 0x2c9   : > { %v3067_v27 = vpack.c.bf16 %v1163_v23, %v1158_v24  ;;  %v1022_v28 = vpop.f32.mrf.mxu0  ;;  %v1173_v30 = vadd.f32 %v2515_v26, %v2459_v25  ;;  %2584 = vmatpush3.msra.mxu1 %v1680_v12  ;;  %v2086_v25 = vunpack.c.h.bf16 %v3061_v13 }
 0x2ca   : > { %v1167_v29 = vpop.f32.mrf.mxu1  ;;  %v2643_v61 = vld [vmem:[#allocation3 + $0x8] sm:$0xff]   ;;  %2585 = vmatprep.subr.mxu1 %v1679_v14 }
 0x2cb   : > { %2113 = vst [vmem:[#allocation3 + $0x18] sm:$0xff] %v3067_v27   ;;  %v1168_v31 = vadd.f32 %v1167_v29, %v1022_v28  ;;  %v2462_v32 = vpop.f32.mrf.mxu0  ;;  %2586 = vmatpush3.msra.mxu1 %v1679_v14 }
 0x2cc   : > { %v2518_v33 = vpop.f32.mrf.mxu1  ;;  %2587 = vmatprep.subr.mxu1 %v1678_v15 }
 0x2cd   : > { %v3070_v34 = vpack.c.bf16 %v1173_v30, %v1168_v31  ;;  %v1032_v35 = vpop.f32.mrf.mxu0  ;;  %v1183_v37 = vadd.f32 %v2518_v33, %v2462_v32  ;;  %2588 = vmatpush3.msra.mxu1 %v1678_v15  ;;  %v2082_v31 = vunpack.c.h.bf16 %v3058_v6 }
 0x2ce   : > { %v1177_v36 = vpop.f32.mrf.mxu1  ;;  %v2642_v60 = vld [vmem:[#allocation3 + $0x10] sm:$0xff]  }
 0x2cf   : > { %2114 = vst [vmem:[#allocation3 + $0x20] sm:$0xff] %v3070_v34   ;;  %v1178_v38 = vadd.f32 %v1177_v36, %v1032_v35  ;;  %v2465_v39 = vpop.f32.mrf.mxu0  ;;  %v2097_v63 = vunpack.c.l.bf16 %v3070_v34 }
 0x2d0   : > { %v2521_v40 = vpop.f32.mrf.mxu1 }
 0x2d1   : > { %v3073_v41 = vpack.c.bf16 %v1183_v37, %v1178_v38  ;;  %v1042_v42 = vpop.f32.mrf.mxu0  ;;  %v1193_v44 = vadd.f32 %v2521_v40, %v2465_v39  ;;  %v2093_v37 = vunpack.c.l.bf16 %v3067_v27 }
 0x2d2   : > { %v1187_v43 = vpop.f32.mrf.mxu1  ;;  %v2641_v59 = vld [vmem:[#allocation3 + $0x18] sm:$0xff]  }
 0x2d3   : > { %2115 = vst [vmem:[#allocation3 + $0x28] sm:$0xff] %v3073_v41   ;;  %v1188_v45 = vadd.f32 %v1187_v43, %v1042_v42  ;;  %v2468_v46 = vpop.f32.mrf.mxu0  ;;  %v2089_v42 = vunpack.c.l.bf16 %v3064_v20 }
 0x2d4   : > { %v2524_v47 = vpop.f32.mrf.mxu1 }
 0x2d5   : > { %v3076_v48 = vpack.c.bf16 %v1193_v44, %v1188_v45  ;;  %v1052_v49 = vpop.f32.mrf.mxu0  ;;  %v1203_v52 = vadd.f32 %v2524_v47, %v2468_v46  ;;  %v2094_v46 = vunpack.c.h.bf16 %v3067_v27 }
 0x2d6   : > { %v1197_v51 = vpop.f32.mrf.mxu1  ;;  %v2640_v58 = vld [vmem:[#allocation3 + $0x20] sm:$0xff]  }
 0x2d7   : > { %2116 = vst [vmem:[#allocation3 + $0x30] sm:$0xff] %v3076_v48   ;;  %v1198_v53 = vadd.f32 %v1197_v51, %v1052_v49 }
 0x2d9   : > { %v3079_v54 = vpack.c.bf16 %v1203_v52, %v1198_v53  ;;  %v2090_v53 = vunpack.c.h.bf16 %v3064_v20 }
 0x2da   : > { %v2639_v57 = vld [vmem:[#allocation3 + $0x28] sm:$0xff]  }
 0x2db   : > { %2117 = vst [vmem:[#allocation3 + $0x38] sm:$0xff] %v3079_v54   ;;  %v2109_v14 = vunpack.c.l.bf16 %v3079_v54 }
 0x2de   : > { %v2638_v56 = vld [vmem:[#allocation3 + $0x30] sm:$0xff]  }
 0x2e2   : > { %v2637_v55 = vld [vmem:[#allocation3 + $0x38] sm:$0xff]  }
 0x2e3   : > { %2525 = vmatprep.subr.bf16.mxu0 %v2637_v55 }
 0x2e4   : > { %2526 = vmatpush3.bf16.msra.mxu0 %v2637_v55 }
 0x2e5   : > { %2527 = vmatprep.subr.bf16.mxu0 %v2638_v56 }
 0x2e8   : > { %2528 = vmatpush3.bf16.msra.mxu0 %v2638_v56 }
 0x2e9   : > { %2529 = vmatprep.subr.bf16.mxu0 %v2639_v57 }
 0x2ec   : > { %2530 = vmatpush3.bf16.msra.mxu0 %v2639_v57 }
 0x2ed   : > { %2531 = vmatprep.subr.bf16.mxu0 %v2640_v58 }
 0x2f0   : > { %2532 = vmatpush3.bf16.msra.mxu0 %v2640_v58 }
 0x2f1   : > { %2533 = vmatprep.subr.bf16.mxu0 %v2641_v59 }
 0x2f4   : > { %2534 = vmatpush3.bf16.msra.mxu0 %v2641_v59  ;;  %v2101_v59 = vunpack.c.l.bf16 %v3073_v41 }
 0x2f5   : > { %2535 = vmatprep.subr.bf16.mxu0 %v2642_v60 }
 0x2f8   : > { %2536 = vmatpush3.bf16.msra.mxu0 %v2642_v60 }
 0x2f9   : > { %2537 = vmatprep.subr.bf16.mxu0 %v2643_v61 }
 0x2fc   : > { %2538 = vmatpush3.bf16.msra.mxu0 %v2643_v61 }
 0x2fd   : > { %2539 = vmatprep.subr.bf16.mxu0 %v2644_v62 }
 0x300   : > { %2540 = vmatpush3.bf16.msra.mxu0 %v2644_v62 }
 0x303   : > { %2542 = vmatmul.mubr.bf16.vlgmr.msra.gmra.mxu0 %v1330_v0 }
 0x304   : > { %2545 = vmatprep.mubr.bf16.mxu0 %v1331_v1 }
 0x30b   : > { %2546 = vmatmul.mubr.bf16.gmra.mxu0 %v1332_v3  ;;  %v2102_v3 = vunpack.c.h.bf16 %v3073_v41 }
 0x30c   : > { %2549 = vmatprep.mubr.bf16.mxu0 %v1333_v4 }
 0x313   : > { %2550 = vmatmul.mubr.bf16.gmra.mxu0 %v1334_v50 }
 0x314   : > { %2553 = vmatprep.mubr.bf16.mxu0 %v1335_v7 }
 0x31b   : > { %2554 = vmatmul.mubr.bf16.gmra.mxu0 %v1336_v8  ;;  %v2098_v8 = vunpack.c.h.bf16 %v3070_v34 }
 0x3c3   : > { %v2543_v17 = vpop.f32.mrf.mxu0 }
 0x3c4   : > { %v1591_v19 = vadd.f32 %v2543_v17, %v2085_v16 }
 0x3c5   : > { %v1439_v22 = vpop.f32.mrf.mxu0 }
 0x3c6   : > { %v1614_v23 = vadd.f32 %v3104_v18, %v1591_v19  ;;  %v1589_v24 = vadd.f32 %v2081_v21, %v1439_v22  ;;  %v2105_v19 = vunpack.c.l.bf16 %v3076_v48 }
 0x3c7   : > { %v2544_v26 = vpop.f32.mrf.mxu0 }
 0x3c8   : > { %v1630_v28 = vmax.f32 %v1614_v23, 0.0  ;;  %v1612_v29 = vadd.f32 %v3104_v18, %v1589_v24  ;;  %v1592_v30 = vadd.f32 %v2544_v26, %v2086_v25  ;;  %v2110_v24 = vunpack.c.h.bf16 %v3079_v54 }
 0x3c9   : > { %v1442_v32 = vpop.f32.mrf.mxu0 }
 0x3ca   : > { %1647 = vst [vmem:[#allocation2 + $0x58] sm:$0xff] %v1630_v28  ;;  %v1628_v33 = vmax.f32 %v1612_v29, 0.0  ;;  %v1615_v35 = vadd.f32 %v3104_v18, %v1592_v30  ;;  %v1590_v36 = vadd.f32 %v2082_v31, %v1442_v32  ;;  %v2106_v30 = vunpack.c.h.bf16 %v3076_v48  ;;  %v1663_v48 = vld [vmem:[%s3252_s10 + $0x8] sm:$0xff] }
 0x3cb   : > { %v2547_v38 = vpop.f32.mrf.mxu0 }
 0x3cc   : > { %1645 = vst [vmem:[#allocation2 + $0x30] sm:$0xff] %v1628_v33  ;;  %v1631_v39 = vmax.f32 %v1615_v35, 0.0  ;;  %v1613_v13 = vadd.f32 %v3104_v18, %v1590_v36  ;;  %v1595_v40 = vadd.f32 %v2547_v38, %v2093_v37  ;;  %2589 = vmatprep.mubr.f32.mxu1 %v1628_v33 }
 0x3cd   : > { %v1455_v43 = vpop.f32.mrf.mxu0 }
 0x3ce   : > { %1648 = vst [vmem:[#allocation2 + $0x18] sm:$0xff] %v1631_v39  ;;  %v1629_v6 = vmax.f32 %v1613_v13, 0.0  ;;  %v1618_v44 = vadd.f32 %v3104_v18, %v1595_v40  ;;  %v1593_v45 = vadd.f32 %v2089_v42, %v1455_v43 }
 0x3cf   : > { %v2548_v47 = vpop.f32.mrf.mxu0 }
 0x3d0   : > { %1646 = vst [vmem:[#allocation2] sm:$0xff] %v1629_v6  ;;  %v1634_v49 = vmax.f32 %v1618_v44, 0.0  ;;  %v1616_v51 = vadd.f32 %v3104_v18, %v1593_v45  ;;  %v1596_v52 = vadd.f32 %v2548_v47, %v2094_v46  ;;  %2590 = vmatmul.mubr.f32.vlgmr.msra.gmra.mxu1 %v1629_v6  ;;  %v1664_v6 = vld [vmem:[%s3252_s10 + $0x10] sm:$0xff]  ;;  %v1667_v46 = vld [vmem:[%s3252_s10 + $0x28] sm:$0xff] }
 0x3d1   : > { %v1458_v55 = vpop.f32.mrf.mxu0  ;;  %2592 = vmatprep.mubr.f32.mxu1 %v1630_v28 }
 0x3d2   : > { %1651 = vst [vmem:[#allocation2 + $0x8] sm:$0xff] %v1634_v49  ;;  %v1632_v56 = vmax.f32 %v1616_v51, 0.0  ;;  %v1619_v57 = vadd.f32 %v3104_v18, %v1596_v52  ;;  %v1594_v58 = vadd.f32 %v2090_v53, %v1458_v55  ;;  %v1666_v51 = vld [vmem:[%s3252_s10 + $0x20] sm:$0xff]  ;;  %v1669_v55 = vld [vmem:[%s3252_s10 + $0x38] sm:$0xff] }
 0x3d3   : > { %v2551_v60 = vpop.f32.mrf.mxu0 }
 0x3d4   : > { %1649 = vst [vmem:[#allocation2 + $0x50] sm:$0xff] %v1632_v56  ;;  %v1635_v27 = vmax.f32 %v1619_v57, 0.0  ;;  %v1617_v61 = vadd.f32 %v3104_v18, %v1594_v58  ;;  %v1599_v62 = vadd.f32 %v2551_v60, %v2101_v59  ;;  %2593 = vmatmul.mubr.f32.gmra.mxu1 %v1631_v39  ;;  %v1662_v39 = vld [vmem:[%s3252_s10] sm:$0xff]  ;;  %v1668_v58 = vld [vmem:[%s3252_s10 + $0x30] sm:$0xff] }
 0x3d5   : > { %v1471_v0 = vpop.f32.mrf.mxu0  ;;  %2595 = vmatprep.mubr.f32.mxu1 %v1632_v56 }
 0x3d6   : > { %1652 = vst [vmem:[#allocation2 + $0x48] sm:$0xff] %v1635_v27  ;;  %v1633_v20 = vmax.f32 %v1617_v61, 0.0  ;;  %v1622_v1 = vadd.f32 %v3104_v18, %v1599_v62  ;;  %v1597_v2 = vadd.f32 %v2097_v63, %v1471_v0  ;;  %v1670_v63 = vld [vmem:[%s3252_s10 + $0x40] sm:$0xff] }
 0x3d7   : > { %v2552_v4 = vpop.f32.mrf.mxu0 }
 0x3d8   : > { %1650 = vst [vmem:[#allocation2 + $0x68] sm:$0xff] %v1633_v20  ;;  %v1638_v5 = vmax.f32 %v1622_v1, 0.0  ;;  %v1620_v50 = vadd.f32 %v3104_v18, %v1597_v2  ;;  %v1600_v7 = vadd.f32 %v2552_v4, %v2102_v3  ;;  %2596 = vmatmul.mubr.f32.gmra.mxu1 %v1633_v20  ;;  %v1673_v1 = vld [vmem:[%s3252_s10 + $0x58] sm:$0xff]  ;;  %v1672_v4 = vld [vmem:[%s3252_s10 + $0x50] sm:$0xff] }
 0x3d9   : > { %v1474_v9 = vpop.f32.mrf.mxu0  ;;  %2598 = vmatprep.mubr.f32.mxu1 %v1634_v49 }
 0x3da   : > { %1655 = vst [vmem:[#allocation2 + $0x10] sm:$0xff] %v1638_v5  ;;  %v1636_v10 = vmax.f32 %v1620_v50, 0.0  ;;  %v1623_v11 = vadd.f32 %v3104_v18, %v1600_v7  ;;  %v1598_v12 = vadd.f32 %v2098_v8, %v1474_v9  ;;  %v1675_v7 = vld [vmem:[%s3252_s10 + $0x68] sm:$0xff] }
 0x3db   : > { %v2555_v15 = vpop.f32.mrf.mxu0 }
 0x3dc   : > { %1653 = vst [vmem:[#allocation2 + $0x40] sm:$0xff] %v1636_v10  ;;  %v1639_v41 = vmax.f32 %v1623_v11, 0.0  ;;  %v1621_v16 = vadd.f32 %v3104_v18, %v1598_v12  ;;  %v1603_v17 = vadd.f32 %v2555_v15, %v2109_v14  ;;  %2599 = vmatmul.mubr.f32.gmra.mxu1 %v1635_v27  ;;  %v1671_v27 = vld [vmem:[%s3252_s10 + $0x48] sm:$0xff]  ;;  %v1677_v14 = vld [vmem:[%s3252_s10 + $0x78] sm:$0xff] }
 0x3dd   : > { %v1487_v21 = vpop.f32.mrf.mxu0  ;;  %2601 = vmatprep.mubr.f32.mxu1 %v1636_v10  ;;  %v1674_v10 = vld [vmem:[%s3252_s10 + $0x60] sm:$0xff] }
 0x3de   : > { %1656 = vst [vmem:[#allocation2 + $0x38] sm:$0xff] %v1639_v41  ;;  %v1637_v34 = vmax.f32 %v1621_v16, 0.0  ;;  %v1626_v22 = vadd.f32 %v3104_v18, %v1603_v17  ;;  %v1601_v23 = vadd.f32 %v2105_v19, %v1487_v21  ;;  %v1676_v16 = vld [vmem:[%s3252_s10 + $0x70] sm:$0xff] }
 0x3df   : > { %v2556_v25 = vpop.f32.mrf.mxu0 }
 0x3e0   : > { %1654 = vst [vmem:[#allocation2 + $0x20] sm:$0xff] %v1637_v34  ;;  %v1642_v26 = vmax.f32 %v1626_v22, 0.0  ;;  %v1624_v28 = vadd.f32 %v3104_v18, %v1601_v23  ;;  %v1604_v29 = vadd.f32 %v2556_v25, %v2110_v24  ;;  %2602 = vmatmul.mubr.f32.gmra.mxu1 %v1637_v34 }
 0x3e1   : > { %v1490_v31 = vpop.f32.mrf.mxu0  ;;  %2604 = vmatprep.mubr.f32.mxu1 %v1638_v5 }
 0x3e2   : > { %1659 = vst [vmem:[#allocation2 + $0x78] sm:$0xff] %v1642_v26  ;;  %v1640_v32 = vmax.f32 %v1624_v28, 0.0  ;;  %v1627_v33 = vadd.f32 %v3104_v18, %v1604_v29  ;;  %v1602_v35 = vadd.f32 %v2106_v30, %v1490_v31 }
 0x3e4   : > { %1657 = vst [vmem:[#allocation2 + $0x60] sm:$0xff] %v1640_v32  ;;  %v1643_v36 = vmax.f32 %v1627_v33, 0.0  ;;  %v1625_v54 = vadd.f32 %v3104_v18, %v1602_v35  ;;  %2605 = vmatmul.mubr.f32.gmra.mxu1 %v1639_v41  ;;  %v1665_v18 = vld [vmem:[%s3252_s10 + $0x18] sm:$0xff] }
 0x3e5   : > { %2607 = vmatprep.mubr.f32.mxu1 %v1640_v32 }
 0x3e6   : > { %1660 = vst [vmem:[#allocation2 + $0x28] sm:$0xff] %v1643_v36  ;;  %v1641_v37 = vmax.f32 %v1625_v54, 0.0 }
 0x3e8   : > { %1658 = vst [vmem:[#allocation2 + $0x70] sm:$0xff] %v1641_v37  ;;  %2608 = vmatmul.mubr.f32.gmra.mxu1 %v1641_v37 }
 0x3e9   : > { %2610 = vmatprep.mubr.f32.mxu1 %v1642_v26 }
 0x3ec   : > { %2611 = vmatmul.mubr.f32.gmra.mxu1 %v1643_v36 }
 0x490   : > { %v2591_v38 = vpop.f32.mrf.mxu1 }
 0x491   : > { %v1840_v13 = vadd.f32 %v2591_v38, %v1663_v48 }
 0x492   : > { %v1760_v40 = vpop.f32.mrf.mxu1 }
 0x493   : > { %1856 = vst [vmem:[%s3252_s10 + $0x8] sm:$0xff] %v1840_v13  ;;  %v1839_v42 = vadd.f32 %v1760_v40, %v1662_v39 }
 0x494   : > { %v2594_v43 = vpop.f32.mrf.mxu1 }
 0x495   : > { %1855 = vst [vmem:[%s3252_s10] sm:$0xff] %v1839_v42  ;;  %v1842_v44 = vadd.f32 %v2594_v43, %v1665_v18 }
 0x496   : > { %v1770_v45 = vpop.f32.mrf.mxu1 }
 0x497   : > { %1858 = vst [vmem:[%s3252_s10 + $0x18] sm:$0xff] %v1842_v44  ;;  %v1841_v47 = vadd.f32 %v1770_v45, %v1664_v6 }
 0x498   : > { %v2597_v49 = vpop.f32.mrf.mxu1 }
 0x499   : > { %1857 = vst [vmem:[%s3252_s10 + $0x10] sm:$0xff] %v1841_v47  ;;  %v1844_v52 = vadd.f32 %v2597_v49, %v1667_v46 }
 0x49a   : > { %v1780_v53 = vpop.f32.mrf.mxu1 }
 0x49b   : > { %1860 = vst [vmem:[%s3252_s10 + $0x28] sm:$0xff] %v1844_v52  ;;  %v1843_v56 = vadd.f32 %v1780_v53, %v1666_v51 }
 0x49c   : > { %v2600_v57 = vpop.f32.mrf.mxu1 }
 0x49d   : > { %1859 = vst [vmem:[%s3252_s10 + $0x20] sm:$0xff] %v1843_v56  ;;  %v1846_v59 = vadd.f32 %v2600_v57, %v1669_v55 }
 0x49e   : > { %v1790_v60 = vpop.f32.mrf.mxu1 }
 0x49f   : > { %1862 = vst [vmem:[%s3252_s10 + $0x38] sm:$0xff] %v1846_v59  ;;  %v1845_v61 = vadd.f32 %v1790_v60, %v1668_v58 }
 0x4a0   : > { %v2603_v62 = vpop.f32.mrf.mxu1 }
 0x4a1   : > { %1861 = vst [vmem:[%s3252_s10 + $0x30] sm:$0xff] %v1845_v61  ;;  %v1848_v0 = vadd.f32 %v2603_v62, %v1671_v27 }
 0x4a2   : > { %v1800_v20 = vpop.f32.mrf.mxu1 }
 0x4a3   : > { %1864 = vst [vmem:[%s3252_s10 + $0x48] sm:$0xff] %v1848_v0  ;;  %v1847_v2 = vadd.f32 %v1800_v20, %v1670_v63 }
 0x4a4   : > { %v2606_v3 = vpop.f32.mrf.mxu1 }
 0x4a5   : > { %1863 = vst [vmem:[%s3252_s10 + $0x40] sm:$0xff] %v1847_v2  ;;  %v1850_v5 = vadd.f32 %v2606_v3, %v1673_v1 }
 0x4a6   : > { %v1810_v50 = vpop.f32.mrf.mxu1 }
 0x4a7   : > { %1866 = vst [vmem:[%s3252_s10 + $0x58] sm:$0xff] %v1850_v5  ;;  %v1849_v8 = vadd.f32 %v1810_v50, %v1672_v4 }
 0x4a8   : > { %v2609_v9 = vpop.f32.mrf.mxu1 }
 0x4a9   : > { %1865 = vst [vmem:[%s3252_s10 + $0x50] sm:$0xff] %v1849_v8  ;;  %v1852_v11 = vadd.f32 %v2609_v9, %v1675_v7 }
 0x4aa   : > { %v1820_v12 = vpop.f32.mrf.mxu1 }
 0x4ab   : > { %1868 = vst [vmem:[%s3252_s10 + $0x68] sm:$0xff] %v1852_v11  ;;  %v1851_v15 = vadd.f32 %v1820_v12, %v1674_v10 }
 0x4ac   : > { %v2612_v41 = vpop.f32.mrf.mxu1 }
 0x4ad   : > { %1867 = vst [vmem:[%s3252_s10 + $0x60] sm:$0xff] %v1851_v15  ;;  %v1854_v17 = vadd.f32 %v2612_v41, %v1677_v14 }
 0x4ae   : > { %v1830_v19 = vpop.f32.mrf.mxu1 }
 0x4af   : > { %1870 = vst [vmem:[%s3252_s10 + $0x78] sm:$0xff] %v1854_v17  ;;  %v1853_v21 = vadd.f32 %v1830_v19, %v1676_v16 }
 0x4b1   : > { %1869 = vst [vmem:[%s3252_s10 + $0x70] sm:$0xff] %v1853_v21 }
 0x4b2 PF: > { %s20_s15 = sadd.s32 1, %s2667_s15   ;;  %s3253_s13 = smov %s2663_s14 }
 0x4b3   : > { %p17_p6 = scmp.ge.s32.totalorder %s20_s15, 4   ;;  %s3254_s14 = smov %s3256_s16 }
 0x4b5   :  { %19 = sbr.rel (!%p17_p6) target bundleno = 2 (0x2), region = 121 }

</bundles_post_ra>
